<compile_context>
chip_gen: v6e
topology: v6e:2x2x1
jax: 0.10.0
libtpu: 0.0.40
codegen_flags: <defaults>
</compile_context>

<pallas_src>
import functools

import jax
import jax.numpy as jnp
import numpy as np
from jax.experimental import pallas as pl
from jax.experimental.pallas import tpu as pltpu


def _pair_block_kernel(ii_ref, jj_ref, reps_ref, w_ref, out_ref, *, pps):
    """Processes PPS agent pairs per grid step.

    ii_ref/jj_ref : (num_pairs_padded,) int32 SMEM, scalar-prefetched pair indices
    reps_ref      : (A, B, D) f32 VMEM, resident across the whole grid
    w_ref         : (PPS, D, P) f32 VMEM, this step's un-normalized projections
    out_ref       : (PPS, P)    f32, per-pair sum_k (x_(k) - y_(k))^2
    """
    g = pl.program_id(0)
    _, B, _ = reps_ref.shape
    P = w_ref.shape[-1]

    row = jax.lax.broadcasted_iota(jnp.int32, (B, P), 0)

    def _ranks(v):
        # Per-column rank of each row (stable tie-break) -> equals an ascending sort.
        # TODO(synk): for large B replace this O(B^2) rank net with a bitonic
        # compare-exchange sort using pltpu.roll (O(B log^2 B), splits VPU/XLU slots).
        r = jnp.zeros((B, P), jnp.int32)
        for j in range(B):
            vj = v[j:j + 1, :]                                 # (1, P)
            less = vj < v
            tie = (vj == v) & (j < row)
            r = r + (less | tie).astype(jnp.int32)
        return r

    rows = []
    for t in range(pps):
        pair = g * pps + t
        x = reps_ref[ii_ref[pair]]                             # (B, D)
        y = reps_ref[jj_ref[pair]]                             # (B, D)

        # Column L2 norms in f32; scale the matmul *outputs* instead of
        # materializing a normalized (D, P) copy. rsqrt == 1 / max(||w||, 1e-12).
        w = w_ref[t]                                           # (D, P) f32
        sumsq = jnp.sum(w * w, axis=0, keepdims=True)          # (1, P)
        inv_norm = jax.lax.rsqrt(jnp.maximum(sumsq, 1e-24))

        # One taller MXU matmul for both agents; bf16 inputs, f32 accumulate.
        # TODO(synk): stream projections as bf16 from HBM too to halve DMA bytes.
        xy = jnp.concatenate([x, y], axis=0)                   # (2B, D)
        proj = jnp.dot(xy.astype(jnp.bfloat16), w.astype(jnp.bfloat16),
                       preferred_element_type=jnp.float32) * inv_norm
        px = proj[:B]                                          # (B, P)
        py = proj[B:]                                          # (B, P)

        rx = _ranks(px)
        ry = _ranks(py)

        # Reduce over the batch axis in-kernel: acc = sum_k (x_(k) - y_(k))^2.
        zero = jnp.zeros_like(px)
        acc = jnp.zeros((1, P), jnp.float32)
        for k in range(B):
            xk = jnp.sum(jnp.where(rx == k, px, zero), axis=0, keepdims=True)
            yk = jnp.sum(jnp.where(ry == k, py, zero), axis=0, keepdims=True)
            d = xk - yk
            acc = acc + d * d
        rows.append(acc)                                       # (1, P)

    out_ref[...] = jnp.concatenate(rows, axis=0)               # (PPS, P) lane-dense store


def sliced_wasserstein_layer_regularizer(agent_reps, projections, *, pairs_per_step=8):
    """agent_reps: (A, B, D) f32, projections: (num_pairs, D, P) f32 -> scalar f32."""
    A, B, D = agent_reps.shape
    num_pairs, _, P = projections.shape
    if A < 2 or num_pairs == 0:
        return jnp.float32(0.0)

    # Block the pair axis (amortize ~0.35us/step overhead) but keep >= 2 grid steps
    # when possible so the parallel pair axis can shard across v7x's two TensorCores.
    pps = max(1, min(pairs_per_step, pl.cdiv(num_pairs, 2)))
    num_steps = pl.cdiv(num_pairs, pps)
    padded = num_steps * pps

    ii = np.zeros((padded,), np.int32)
    jj = np.zeros((padded,), np.int32)
    p = 0
    for i in range(A):
        for j in range(i + 1, A):
            ii[p], jj[p] = i, j
            p += 1
    assert p == num_pairs
    ii = jnp.asarray(ii)
    jj = jnp.asarray(jj)

    if padded != num_pairs:
        # Padded pairs use agent (0, 0) and zero projections -> contribute exactly 0.
        pad = jnp.zeros((padded - num_pairs, D, P), projections.dtype)
        projections = jnp.concatenate([projections, pad], axis=0)

    # TODO(synk): for large A*B*D on v7x (64 MiB VMEM), drop the resident reps block
    # and gather the two agents per step with scalar-prefetched index maps instead;
    # also set vmem_limit_bytes explicitly once reps + projection tiles grow.
    kernel = functools.partial(_pair_block_kernel, pps=pps)

    per_pair = pl.pallas_call(
        kernel,
        out_shape=jax.ShapeDtypeStruct((num_steps, pps, P), jnp.float32),
        grid_spec=pltpu.PrefetchScalarGridSpec(
            num_scalar_prefetch=2,
            grid=(num_steps,),
            in_specs=[
                # Whole agent_reps resident in VMEM (constant block index).
                pl.BlockSpec((A, B, D), lambda g, ii_s, jj_s: (0, 0, 0)),
                # PPS projection matrices streamed through the pipeline per step.
                pl.BlockSpec((pps, D, P), lambda g, ii_s, jj_s: (g, 0, 0)),
            ],
            # One lane-dense (PPS, P) block of batch-reduced results per step.
            out_specs=pl.BlockSpec((None, pps, P), lambda g, ii_s, jj_s: (g, 0, 0)),
        ),
        compiler_params=pltpu.CompilerParams(dimension_semantics=("parallel",)),
    )(ii, jj, agent_reps, projections)

    # Batch reduction already done in-kernel; /B, mean over projections, mean over pairs.
    return jnp.sum(per_pair) / jnp.float32(B * P * num_pairs)


def _reference(agent_reps, projections):
    """Pure-JAX f32 reference matching the PyTorch forward (same projections)."""
    A, B, D = agent_reps.shape
    num_pairs, _, P = projections.shape
    norm = jnp.sqrt(jnp.sum(projections * projections, axis=1, keepdims=True))
    proj = projections / jnp.maximum(norm, 1e-12)
    total = 0.0
    p = 0
    for i in range(A):
        for j in range(i + 1, A):
            px = jnp.sort(agent_reps[i] @ proj[p], axis=0)
            py = jnp.sort(agent_reps[j] @ proj[p], axis=0)
            total = total + jnp.mean(jnp.sum((px - py) ** 2, axis=0) / B)
            p += 1
    return total / num_pairs


if __name__ == "__main__":
    # Small, module-consistent shapes: 3 agents, batch=8, features=32, 128 projections.
    A, B, D, P = 3, 8, 32, 128
    num_pairs = A * (A - 1) // 2

    key = jax.random.PRNGKey(0)
    k_reps, k_proj = jax.random.split(key)
    agent_reps = jax.random.normal(k_reps, (A, B, D), dtype=jnp.float32)
    # Deterministic stand-in for torch.randn(dim_features, num_projections) per pair.
    projections = jax.random.normal(k_proj, (num_pairs, D, P), dtype=jnp.float32)

    result = jax.block_until_ready(
        jax.jit(sliced_wasserstein_layer_regularizer)(agent_reps, projections)
    )
    expected = jax.block_until_ready(_reference(agent_reps, projections))

    # bf16 MXU inputs (f32 accumulate) vs an f32 reference -> slightly looser tolerance.
    np.testing.assert_allclose(np.asarray(result), np.asarray(expected),
                               rtol=3e-2, atol=1e-3)
    print("KERNEL_OK")
</pallas_src>

<mosaic_0001>
module attributes {stable_mosaic.version = 11 : i64} {
  func.func @_pair_block_kernel(%arg0: i32, %arg1: memref<4xi32, #tpu.memory_space<smem>>, %arg2: memref<4xi32, #tpu.memory_space<smem>>, %arg3: memref<3x8x32xf32, #tpu.memory_space<vmem>>, %arg4: memref<2x32x128xf32, #tpu.memory_space<vmem>>, %arg5: memref<1x2x128xf32, #tpu.memory_space<vmem>>) attributes {dimension_semantics = [#tpu.dimension_semantics<parallel>], iteration_bounds = array<i64: 2>, scalar_prefetch = 2 : i64, scratch_operands = 0 : i64, tpu.core_type = #tpu.core_type<tc>, window_params = [{pipeline_mode = #tpu.pipeline_mode<synchronous>, transform_indices = @transform_0, window_bounds = array<i64: 3, 8, 32>}, {transform_indices = @transform_1, window_bounds = array<i64: 2, 32, 128>}, {transform_indices = @transform_2, window_bounds = array<i64: 1, 2, 128>}]} {
    %0 = tpu.iota {dimensions = array<i32: 0>} : vector<8x128xi32>
    %c2_i32 = arith.constant 2 : i32
    %1 = arith.muli %arg0, %c2_i32 : i32
    %c0_i32 = arith.constant 0 : i32
    %2 = arith.addi %1, %c0_i32 : i32
    %3 = arith.index_cast %2 : i32 to index
    %4 = memref.load %arg1[%3] : memref<4xi32, #tpu.memory_space<smem>>
    %5 = arith.index_cast %4 : i32 to index
    %c0 = arith.constant 0 : index
    %c0_0 = arith.constant 0 : index
    %6 = vector.load %arg3[%5, %c0, %c0_0] : memref<3x8x32xf32, #tpu.memory_space<vmem>>, vector<1x8x32xf32>
    %7 = vector.shape_cast %6 : vector<1x8x32xf32> to vector<8x32xf32>
    %8 = arith.index_cast %2 : i32 to index
    %9 = memref.load %arg2[%8] : memref<4xi32, #tpu.memory_space<smem>>
    %10 = arith.index_cast %9 : i32 to index
    %c0_1 = arith.constant 0 : index
    %c0_2 = arith.constant 0 : index
    %11 = vector.load %arg3[%10, %c0_1, %c0_2] : memref<3x8x32xf32, #tpu.memory_space<vmem>>, vector<1x8x32xf32>
    %12 = vector.shape_cast %11 : vector<1x8x32xf32> to vector<8x32xf32>
    %c0_3 = arith.constant 0 : index
    %c0_4 = arith.constant 0 : index
    %c0_5 = arith.constant 0 : index
    %13 = vector.load %arg4[%c0_3, %c0_4, %c0_5] : memref<2x32x128xf32, #tpu.memory_space<vmem>>, vector<1x32x128xf32>
    %14 = vector.shape_cast %13 : vector<1x32x128xf32> to vector<32x128xf32>
    %15 = arith.mulf %14, %14 : vector<32x128xf32>
    %cst = arith.constant dense<0.000000e+00> : vector<128xf32>
    %16 = vector.multi_reduction <add>, %15, %cst [0] : vector<32x128xf32> to vector<128xf32>
    %17 = vector.shape_cast %16 : vector<128xf32> to vector<1x128xf32>
    %cst_6 = arith.constant 1.000000e-24 : f32
    %18 = vector.broadcast %cst_6 : f32 to vector<1x128xf32>
    %19 = arith.maximumf %17, %18 : vector<1x128xf32>
    %20 = math.rsqrt %19 : vector<1x128xf32>
    %21 = tpu.concatenate %7, %12 in 0 : vector<8x32xf32>, vector<8x32xf32> -> vector<16x32xf32>
    %22 = arith.truncf %21 : vector<16x32xf32> to vector<16x32xbf16>
    %23 = arith.truncf %14 : vector<32x128xf32> to vector<32x128xbf16>
    %cst_7 = arith.constant dense<0.000000e+00> : vector<16x128xf32>
    %24 = tpu.matmul %22, %23, %cst_7 {dimension_numbers = #tpu.dot_dimension_numbers<[1], [0], [0], [1], [0, 0, 1, 1], [], []>} : vector<16x32xbf16>, vector<32x128xbf16>, vector<16x128xf32> -> vector<16x128xf32>
    %25 = vector.broadcast %20 : vector<1x128xf32> to vector<16x128xf32>
    %26 = arith.mulf %24, %25 : vector<16x128xf32>
    %27 = vector.extract_strided_slice %26 {offsets = [0, 0], sizes = [8, 128], strides = [1, 1]} : vector<16x128xf32> to vector<8x128xf32>
    %28 = vector.extract_strided_slice %26 {offsets = [8, 0], sizes = [8, 128], strides = [1, 1]} : vector<16x128xf32> to vector<8x128xf32>
    %c0_i32_8 = arith.constant 0 : i32
    %29 = vector.broadcast %c0_i32_8 : i32 to vector<8x128xi32>
    %30 = vector.extract_strided_slice %27 {offsets = [0, 0], sizes = [1, 128], strides = [1, 1]} : vector<8x128xf32> to vector<1x128xf32>
    %31 = vector.broadcast %30 : vector<1x128xf32> to vector<8x128xf32>
    %32 = arith.cmpf olt, %31, %27 : vector<8x128xf32>
    %33 = vector.broadcast %30 : vector<1x128xf32> to vector<8x128xf32>
    %34 = arith.cmpf oeq, %33, %27 : vector<8x128xf32>
    %c0_i32_9 = arith.constant 0 : i32
    %35 = vector.broadcast %c0_i32_9 : i32 to vector<8x128xi32>
    %36 = arith.cmpi sgt, %0, %35 : vector<8x128xi32>
    %37 = arith.andi %34, %36 : vector<8x128xi1>
    %38 = arith.ori %32, %37 : vector<8x128xi1>
    %39 = arith.extui %38 : vector<8x128xi1> to vector<8x128xi32>
    %40 = arith.addi %29, %39 : vector<8x128xi32>
    %41 = vector.extract_strided_slice %27 {offsets = [1, 0], sizes = [1, 128], strides = [1, 1]} : vector<8x128xf32> to vector<1x128xf32>
    %42 = vector.broadcast %41 : vector<1x128xf32> to vector<8x128xf32>
    %43 = arith.cmpf olt, %42, %27 : vector<8x128xf32>
    %44 = vector.broadcast %41 : vector<1x128xf32> to vector<8x128xf32>
    %45 = arith.cmpf oeq, %44, %27 : vector<8x128xf32>
    %c1_i32 = arith.constant 1 : i32
    %46 = vector.broadcast %c1_i32 : i32 to vector<8x128xi32>
    %47 = arith.cmpi sgt, %0, %46 : vector<8x128xi32>
    %48 = arith.andi %45, %47 : vector<8x128xi1>
    %49 = arith.ori %43, %48 : vector<8x128xi1>
    %50 = arith.extui %49 : vector<8x128xi1> to vector<8x128xi32>
    %51 = arith.addi %40, %50 : vector<8x128xi32>
    %52 = vector.extract_strided_slice %27 {offsets = [2, 0], sizes = [1, 128], strides = [1, 1]} : vector<8x128xf32> to vector<1x128xf32>
    %53 = vector.broadcast %52 : vector<1x128xf32> to vector<8x128xf32>
    %54 = arith.cmpf olt, %53, %27 : vector<8x128xf32>
    %55 = vector.broadcast %52 : vector<1x128xf32> to vector<8x128xf32>
    %56 = arith.cmpf oeq, %55, %27 : vector<8x128xf32>
    %c2_i32_10 = arith.constant 2 : i32
    %57 = vector.broadcast %c2_i32_10 : i32 to vector<8x128xi32>
    %58 = arith.cmpi sgt, %0, %57 : vector<8x128xi32>
    %59 = arith.andi %56, %58 : vector<8x128xi1>
    %60 = arith.ori %54, %59 : vector<8x128xi1>
    %61 = arith.extui %60 : vector<8x128xi1> to vector<8x128xi32>
    %62 = arith.addi %51, %61 : vector<8x128xi32>
    %63 = vector.extract_strided_slice %27 {offsets = [3, 0], sizes = [1, 128], strides = [1, 1]} : vector<8x128xf32> to vector<1x128xf32>
    %64 = vector.broadcast %63 : vector<1x128xf32> to vector<8x128xf32>
    %65 = arith.cmpf olt, %64, %27 : vector<8x128xf32>
    %66 = vector.broadcast %63 : vector<1x128xf32> to vector<8x128xf32>
    %67 = arith.cmpf oeq, %66, %27 : vector<8x128xf32>
    %c3_i32 = arith.constant 3 : i32
    %68 = vector.broadcast %c3_i32 : i32 to vector<8x128xi32>
    %69 = arith.cmpi sgt, %0, %68 : vector<8x128xi32>
    %70 = arith.andi %67, %69 : vector<8x128xi1>
    %71 = arith.ori %65, %70 : vector<8x128xi1>
    %72 = arith.extui %71 : vector<8x128xi1> to vector<8x128xi32>
    %73 = arith.addi %62, %72 : vector<8x128xi32>
    %74 = vector.extract_strided_slice %27 {offsets = [4, 0], sizes = [1, 128], strides = [1, 1]} : vector<8x128xf32> to vector<1x128xf32>
    %75 = vector.broadcast %74 : vector<1x128xf32> to vector<8x128xf32>
    %76 = arith.cmpf olt, %75, %27 : vector<8x128xf32>
    %77 = vector.broadcast %74 : vector<1x128xf32> to vector<8x128xf32>
    %78 = arith.cmpf oeq, %77, %27 : vector<8x128xf32>
    %c4_i32 = arith.constant 4 : i32
    %79 = vector.broadcast %c4_i32 : i32 to vector<8x128xi32>
    %80 = arith.cmpi sgt, %0, %79 : vector<8x128xi32>
    %81 = arith.andi %78, %80 : vector<8x128xi1>
    %82 = arith.ori %76, %81 : vector<8x128xi1>
    %83 = arith.extui %82 : vector<8x128xi1> to vector<8x128xi32>
    %84 = arith.addi %73, %83 : vector<8x128xi32>
    %85 = vector.extract_strided_slice %27 {offsets = [5, 0], sizes = [1, 128], strides = [1, 1]} : vector<8x128xf32> to vector<1x128xf32>
    %86 = vector.broadcast %85 : vector<1x128xf32> to vector<8x128xf32>
    %87 = arith.cmpf olt, %86, %27 : vector<8x128xf32>
    %88 = vector.broadcast %85 : vector<1x128xf32> to vector<8x128xf32>
    %89 = arith.cmpf oeq, %88, %27 : vector<8x128xf32>
    %c5_i32 = arith.constant 5 : i32
    %90 = vector.broadcast %c5_i32 : i32 to vector<8x128xi32>
    %91 = arith.cmpi sgt, %0, %90 : vector<8x128xi32>
    %92 = arith.andi %89, %91 : vector<8x128xi1>
    %93 = arith.ori %87, %92 : vector<8x128xi1>
    %94 = arith.extui %93 : vector<8x128xi1> to vector<8x128xi32>
    %95 = arith.addi %84, %94 : vector<8x128xi32>
    %96 = vector.extract_strided_slice %27 {offsets = [6, 0], sizes = [1, 128], strides = [1, 1]} : vector<8x128xf32> to vector<1x128xf32>
    %97 = vector.broadcast %96 : vector<1x128xf32> to vector<8x128xf32>
    %98 = arith.cmpf olt, %97, %27 : vector<8x128xf32>
    %99 = vector.broadcast %96 : vector<1x128xf32> to vector<8x128xf32>
    %100 = arith.cmpf oeq, %99, %27 : vector<8x128xf32>
    %c6_i32 = arith.constant 6 : i32
    %101 = vector.broadcast %c6_i32 : i32 to vector<8x128xi32>
    %102 = arith.cmpi sgt, %0, %101 : vector<8x128xi32>
    %103 = arith.andi %100, %102 : vector<8x128xi1>
    %104 = arith.ori %98, %103 : vector<8x128xi1>
    %105 = arith.extui %104 : vector<8x128xi1> to vector<8x128xi32>
    %106 = arith.addi %95, %105 : vector<8x128xi32>
    %107 = vector.extract_strided_slice %27 {offsets = [7, 0], sizes = [1, 128], strides = [1, 1]} : vector<8x128xf32> to vector<1x128xf32>
    %108 = vector.broadcast %107 : vector<1x128xf32> to vector<8x128xf32>
    %109 = arith.cmpf olt, %108, %27 : vector<8x128xf32>
    %110 = vector.broadcast %107 : vector<1x128xf32> to vector<8x128xf32>
    %111 = arith.cmpf oeq, %110, %27 : vector<8x128xf32>
    %c7_i32 = arith.constant 7 : i32
    %112 = vector.broadcast %c7_i32 : i32 to vector<8x128xi32>
    %113 = arith.cmpi sgt, %0, %112 : vector<8x128xi32>
    %114 = arith.andi %111, %113 : vector<8x128xi1>
    %115 = arith.ori %109, %114 : vector<8x128xi1>
    %116 = arith.extui %115 : vector<8x128xi1> to vector<8x128xi32>
    %117 = arith.addi %106, %116 : vector<8x128xi32>
    %c0_i32_11 = arith.constant 0 : i32
    %118 = vector.broadcast %c0_i32_11 : i32 to vector<8x128xi32>
    %119 = vector.extract_strided_slice %28 {offsets = [0, 0], sizes = [1, 128], strides = [1, 1]} : vector<8x128xf32> to vector<1x128xf32>
    %120 = vector.broadcast %119 : vector<1x128xf32> to vector<8x128xf32>
    %121 = arith.cmpf olt, %120, %28 : vector<8x128xf32>
    %122 = vector.broadcast %119 : vector<1x128xf32> to vector<8x128xf32>
    %123 = arith.cmpf oeq, %122, %28 : vector<8x128xf32>
    %c0_i32_12 = arith.constant 0 : i32
    %124 = vector.broadcast %c0_i32_12 : i32 to vector<8x128xi32>
    %125 = arith.cmpi sgt, %0, %124 : vector<8x128xi32>
    %126 = arith.andi %123, %125 : vector<8x128xi1>
    %127 = arith.ori %121, %126 : vector<8x128xi1>
    %128 = arith.extui %127 : vector<8x128xi1> to vector<8x128xi32>
    %129 = arith.addi %118, %128 : vector<8x128xi32>
    %130 = vector.extract_strided_slice %28 {offsets = [1, 0], sizes = [1, 128], strides = [1, 1]} : vector<8x128xf32> to vector<1x128xf32>
    %131 = vector.broadcast %130 : vector<1x128xf32> to vector<8x128xf32>
    %132 = arith.cmpf olt, %131, %28 : vector<8x128xf32>
    %133 = vector.broadcast %130 : vector<1x128xf32> to vector<8x128xf32>
    %134 = arith.cmpf oeq, %133, %28 : vector<8x128xf32>
    %c1_i32_13 = arith.constant 1 : i32
    %135 = vector.broadcast %c1_i32_13 : i32 to vector<8x128xi32>
    %136 = arith.cmpi sgt, %0, %135 : vector<8x128xi32>
    %137 = arith.andi %134, %136 : vector<8x128xi1>
    %138 = arith.ori %132, %137 : vector<8x128xi1>
    %139 = arith.extui %138 : vector<8x128xi1> to vector<8x128xi32>
    %140 = arith.addi %129, %139 : vector<8x128xi32>
    %141 = vector.extract_strided_slice %28 {offsets = [2, 0], sizes = [1, 128], strides = [1, 1]} : vector<8x128xf32> to vector<1x128xf32>
    %142 = vector.broadcast %141 : vector<1x128xf32> to vector<8x128xf32>
    %143 = arith.cmpf olt, %142, %28 : vector<8x128xf32>
    %144 = vector.broadcast %141 : vector<1x128xf32> to vector<8x128xf32>
    %145 = arith.cmpf oeq, %144, %28 : vector<8x128xf32>
    %c2_i32_14 = arith.constant 2 : i32
    %146 = vector.broadcast %c2_i32_14 : i32 to vector<8x128xi32>
    %147 = arith.cmpi sgt, %0, %146 : vector<8x128xi32>
    %148 = arith.andi %145, %147 : vector<8x128xi1>
    %149 = arith.ori %143, %148 : vector<8x128xi1>
    %150 = arith.extui %149 : vector<8x128xi1> to vector<8x128xi32>
    %151 = arith.addi %140, %150 : vector<8x128xi32>
    %152 = vector.extract_strided_slice %28 {offsets = [3, 0], sizes = [1, 128], strides = [1, 1]} : vector<8x128xf32> to vector<1x128xf32>
    %153 = vector.broadcast %152 : vector<1x128xf32> to vector<8x128xf32>
    %154 = arith.cmpf olt, %153, %28 : vector<8x128xf32>
    %155 = vector.broadcast %152 : vector<1x128xf32> to vector<8x128xf32>
    %156 = arith.cmpf oeq, %155, %28 : vector<8x128xf32>
    %c3_i32_15 = arith.constant 3 : i32
    %157 = vector.broadcast %c3_i32_15 : i32 to vector<8x128xi32>
    %158 = arith.cmpi sgt, %0, %157 : vector<8x128xi32>
    %159 = arith.andi %156, %158 : vector<8x128xi1>
    %160 = arith.ori %154, %159 : vector<8x128xi1>
    %161 = arith.extui %160 : vector<8x128xi1> to vector<8x128xi32>
    %162 = arith.addi %151, %161 : vector<8x128xi32>
    %163 = vector.extract_strided_slice %28 {offsets = [4, 0], sizes = [1, 128], strides = [1, 1]} : vector<8x128xf32> to vector<1x128xf32>
    %164 = vector.broadcast %163 : vector<1x128xf32> to vector<8x128xf32>
    %165 = arith.cmpf olt, %164, %28 : vector<8x128xf32>
    %166 = vector.broadcast %163 : vector<1x128xf32> to vector<8x128xf32>
    %167 = arith.cmpf oeq, %166, %28 : vector<8x128xf32>
    %c4_i32_16 = arith.constant 4 : i32
    %168 = vector.broadcast %c4_i32_16 : i32 to vector<8x128xi32>
    %169 = arith.cmpi sgt, %0, %168 : vector<8x128xi32>
    %170 = arith.andi %167, %169 : vector<8x128xi1>
    %171 = arith.ori %165, %170 : vector<8x128xi1>
    %172 = arith.extui %171 : vector<8x128xi1> to vector<8x128xi32>
    %173 = arith.addi %162, %172 : vector<8x128xi32>
    %174 = vector.extract_strided_slice %28 {offsets = [5, 0], sizes = [1, 128], strides = [1, 1]} : vector<8x128xf32> to vector<1x128xf32>
    %175 = vector.broadcast %174 : vector<1x128xf32> to vector<8x128xf32>
    %176 = arith.cmpf olt, %175, %28 : vector<8x128xf32>
    %177 = vector.broadcast %174 : vector<1x128xf32> to vector<8x128xf32>
    %178 = arith.cmpf oeq, %177, %28 : vector<8x128xf32>
    %c5_i32_17 = arith.constant 5 : i32
    %179 = vector.broadcast %c5_i32_17 : i32 to vector<8x128xi32>
    %180 = arith.cmpi sgt, %0, %179 : vector<8x128xi32>
    %181 = arith.andi %178, %180 : vector<8x128xi1>
    %182 = arith.ori %176, %181 : vector<8x128xi1>
    %183 = arith.extui %182 : vector<8x128xi1> to vector<8x128xi32>
    %184 = arith.addi %173, %183 : vector<8x128xi32>
    %185 = vector.extract_strided_slice %28 {offsets = [6, 0], sizes = [1, 128], strides = [1, 1]} : vector<8x128xf32> to vector<1x128xf32>
    %186 = vector.broadcast %185 : vector<1x128xf32> to vector<8x128xf32>
    %187 = arith.cmpf olt, %186, %28 : vector<8x128xf32>
    %188 = vector.broadcast %185 : vector<1x128xf32> to vector<8x128xf32>
    %189 = arith.cmpf oeq, %188, %28 : vector<8x128xf32>
    %c6_i32_18 = arith.constant 6 : i32
    %190 = vector.broadcast %c6_i32_18 : i32 to vector<8x128xi32>
    %191 = arith.cmpi sgt, %0, %190 : vector<8x128xi32>
    %192 = arith.andi %189, %191 : vector<8x128xi1>
    %193 = arith.ori %187, %192 : vector<8x128xi1>
    %194 = arith.extui %193 : vector<8x128xi1> to vector<8x128xi32>
    %195 = arith.addi %184, %194 : vector<8x128xi32>
    %196 = vector.extract_strided_slice %28 {offsets = [7, 0], sizes = [1, 128], strides = [1, 1]} : vector<8x128xf32> to vector<1x128xf32>
    %197 = vector.broadcast %196 : vector<1x128xf32> to vector<8x128xf32>
    %198 = arith.cmpf olt, %197, %28 : vector<8x128xf32>
    %199 = vector.broadcast %196 : vector<1x128xf32> to vector<8x128xf32>
    %200 = arith.cmpf oeq, %199, %28 : vector<8x128xf32>
    %c7_i32_19 = arith.constant 7 : i32
    %201 = vector.broadcast %c7_i32_19 : i32 to vector<8x128xi32>
    %202 = arith.cmpi sgt, %0, %201 : vector<8x128xi32>
    %203 = arith.andi %200, %202 : vector<8x128xi1>
    %204 = arith.ori %198, %203 : vector<8x128xi1>
    %205 = arith.extui %204 : vector<8x128xi1> to vector<8x128xi32>
    %206 = arith.addi %195, %205 : vector<8x128xi32>
    %cst_20 = arith.constant 0.000000e+00 : f32
    %207 = vector.broadcast %cst_20 : f32 to vector<8x128xf32>
    %cst_21 = arith.constant 0.000000e+00 : f32
    %208 = vector.broadcast %cst_21 : f32 to vector<1x128xf32>
    %c0_i32_22 = arith.constant 0 : i32
    %209 = vector.broadcast %c0_i32_22 : i32 to vector<8x128xi32>
    %210 = arith.cmpi eq, %117, %209 : vector<8x128xi32>
    %211 = arith.select %210, %27, %207 : vector<8x128xi1>, vector<8x128xf32>
    %cst_23 = arith.constant dense<0.000000e+00> : vector<128xf32>
    %212 = vector.multi_reduction <add>, %211, %cst_23 [0] : vector<8x128xf32> to vector<128xf32>
    %213 = vector.shape_cast %212 : vector<128xf32> to vector<1x128xf32>
    %c0_i32_24 = arith.constant 0 : i32
    %214 = vector.broadcast %c0_i32_24 : i32 to vector<8x128xi32>
    %215 = arith.cmpi eq, %206, %214 : vector<8x128xi32>
    %216 = arith.select %215, %28, %207 : vector<8x128xi1>, vector<8x128xf32>
    %cst_25 = arith.constant dense<0.000000e+00> : vector<128xf32>
    %217 = vector.multi_reduction <add>, %216, %cst_25 [0] : vector<8x128xf32> to vector<128xf32>
    %218 = vector.shape_cast %217 : vector<128xf32> to vector<1x128xf32>
    %219 = arith.subf %213, %218 : vector<1x128xf32>
    %220 = arith.mulf %219, %219 : vector<1x128xf32>
    %221 = arith.addf %208, %220 : vector<1x128xf32>
    %c1_i32_26 = arith.constant 1 : i32
    %222 = vector.broadcast %c1_i32_26 : i32 to vector<8x128xi32>
    %223 = arith.cmpi eq, %117, %222 : vector<8x128xi32>
    %224 = arith.select %223, %27, %207 : vector<8x128xi1>, vector<8x128xf32>
    %cst_27 = arith.constant dense<0.000000e+00> : vector<128xf32>
    %225 = vector.multi_reduction <add>, %224, %cst_27 [0] : vector<8x128xf32> to vector<128xf32>
    %226 = vector.shape_cast %225 : vector<128xf32> to vector<1x128xf32>
    %c1_i32_28 = arith.constant 1 : i32
    %227 = vector.broadcast %c1_i32_28 : i32 to vector<8x128xi32>
    %228 = arith.cmpi eq, %206, %227 : vector<8x128xi32>
    %229 = arith.select %228, %28, %207 : vector<8x128xi1>, vector<8x128xf32>
    %cst_29 = arith.constant dense<0.000000e+00> : vector<128xf32>
    %230 = vector.multi_reduction <add>, %229, %cst_29 [0] : vector<8x128xf32> to vector<128xf32>
    %231 = vector.shape_cast %230 : vector<128xf32> to vector<1x128xf32>
    %232 = arith.subf %226, %231 : vector<1x128xf32>
    %233 = arith.mulf %232, %232 : vector<1x128xf32>
    %234 = arith.addf %221, %233 : vector<1x128xf32>
    %c2_i32_30 = arith.constant 2 : i32
    %235 = vector.broadcast %c2_i32_30 : i32 to vector<8x128xi32>
    %236 = arith.cmpi eq, %117, %235 : vector<8x128xi32>
    %237 = arith.select %236, %27, %207 : vector<8x128xi1>, vector<8x128xf32>
    %cst_31 = arith.constant dense<0.000000e+00> : vector<128xf32>
    %238 = vector.multi_reduction <add>, %237, %cst_31 [0] : vector<8x128xf32> to vector<128xf32>
    %239 = vector.shape_cast %238 : vector<128xf32> to vector<1x128xf32>
    %c2_i32_32 = arith.constant 2 : i32
    %240 = vector.broadcast %c2_i32_32 : i32 to vector<8x128xi32>
    %241 = arith.cmpi eq, %206, %240 : vector<8x128xi32>
    %242 = arith.select %241, %28, %207 : vector<8x128xi1>, vector<8x128xf32>
    %cst_33 = arith.constant dense<0.000000e+00> : vector<128xf32>
    %243 = vector.multi_reduction <add>, %242, %cst_33 [0] : vector<8x128xf32> to vector<128xf32>
    %244 = vector.shape_cast %243 : vector<128xf32> to vector<1x128xf32>
    %245 = arith.subf %239, %244 : vector<1x128xf32>
    %246 = arith.mulf %245, %245 : vector<1x128xf32>
    %247 = arith.addf %234, %246 : vector<1x128xf32>
    %c3_i32_34 = arith.constant 3 : i32
    %248 = vector.broadcast %c3_i32_34 : i32 to vector<8x128xi32>
    %249 = arith.cmpi eq, %117, %248 : vector<8x128xi32>
    %250 = arith.select %249, %27, %207 : vector<8x128xi1>, vector<8x128xf32>
    %cst_35 = arith.constant dense<0.000000e+00> : vector<128xf32>
    %251 = vector.multi_reduction <add>, %250, %cst_35 [0] : vector<8x128xf32> to vector<128xf32>
    %252 = vector.shape_cast %251 : vector<128xf32> to vector<1x128xf32>
    %c3_i32_36 = arith.constant 3 : i32
    %253 = vector.broadcast %c3_i32_36 : i32 to vector<8x128xi32>
    %254 = arith.cmpi eq, %206, %253 : vector<8x128xi32>
    %255 = arith.select %254, %28, %207 : vector<8x128xi1>, vector<8x128xf32>
    %cst_37 = arith.constant dense<0.000000e+00> : vector<128xf32>
    %256 = vector.multi_reduction <add>, %255, %cst_37 [0] : vector<8x128xf32> to vector<128xf32>
    %257 = vector.shape_cast %256 : vector<128xf32> to vector<1x128xf32>
    %258 = arith.subf %252, %257 : vector<1x128xf32>
    %259 = arith.mulf %258, %258 : vector<1x128xf32>
    %260 = arith.addf %247, %259 : vector<1x128xf32>
    %c4_i32_38 = arith.constant 4 : i32
    %261 = vector.broadcast %c4_i32_38 : i32 to vector<8x128xi32>
    %262 = arith.cmpi eq, %117, %261 : vector<8x128xi32>
    %263 = arith.select %262, %27, %207 : vector<8x128xi1>, vector<8x128xf32>
    %cst_39 = arith.constant dense<0.000000e+00> : vector<128xf32>
    %264 = vector.multi_reduction <add>, %263, %cst_39 [0] : vector<8x128xf32> to vector<128xf32>
    %265 = vector.shape_cast %264 : vector<128xf32> to vector<1x128xf32>
    %c4_i32_40 = arith.constant 4 : i32
    %266 = vector.broadcast %c4_i32_40 : i32 to vector<8x128xi32>
    %267 = arith.cmpi eq, %206, %266 : vector<8x128xi32>
    %268 = arith.select %267, %28, %207 : vector<8x128xi1>, vector<8x128xf32>
    %cst_41 = arith.constant dense<0.000000e+00> : vector<128xf32>
    %269 = vector.multi_reduction <add>, %268, %cst_41 [0] : vector<8x128xf32> to vector<128xf32>
    %270 = vector.shape_cast %269 : vector<128xf32> to vector<1x128xf32>
    %271 = arith.subf %265, %270 : vector<1x128xf32>
    %272 = arith.mulf %271, %271 : vector<1x128xf32>
    %273 = arith.addf %260, %272 : vector<1x128xf32>
    %c5_i32_42 = arith.constant 5 : i32
    %274 = vector.broadcast %c5_i32_42 : i32 to vector<8x128xi32>
    %275 = arith.cmpi eq, %117, %274 : vector<8x128xi32>
    %276 = arith.select %275, %27, %207 : vector<8x128xi1>, vector<8x128xf32>
    %cst_43 = arith.constant dense<0.000000e+00> : vector<128xf32>
    %277 = vector.multi_reduction <add>, %276, %cst_43 [0] : vector<8x128xf32> to vector<128xf32>
    %278 = vector.shape_cast %277 : vector<128xf32> to vector<1x128xf32>
    %c5_i32_44 = arith.constant 5 : i32
    %279 = vector.broadcast %c5_i32_44 : i32 to vector<8x128xi32>
    %280 = arith.cmpi eq, %206, %279 : vector<8x128xi32>
    %281 = arith.select %280, %28, %207 : vector<8x128xi1>, vector<8x128xf32>
    %cst_45 = arith.constant dense<0.000000e+00> : vector<128xf32>
    %282 = vector.multi_reduction <add>, %281, %cst_45 [0] : vector<8x128xf32> to vector<128xf32>
    %283 = vector.shape_cast %282 : vector<128xf32> to vector<1x128xf32>
    %284 = arith.subf %278, %283 : vector<1x128xf32>
    %285 = arith.mulf %284, %284 : vector<1x128xf32>
    %286 = arith.addf %273, %285 : vector<1x128xf32>
    %c6_i32_46 = arith.constant 6 : i32
    %287 = vector.broadcast %c6_i32_46 : i32 to vector<8x128xi32>
    %288 = arith.cmpi eq, %117, %287 : vector<8x128xi32>
    %289 = arith.select %288, %27, %207 : vector<8x128xi1>, vector<8x128xf32>
    %cst_47 = arith.constant dense<0.000000e+00> : vector<128xf32>
    %290 = vector.multi_reduction <add>, %289, %cst_47 [0] : vector<8x128xf32> to vector<128xf32>
    %291 = vector.shape_cast %290 : vector<128xf32> to vector<1x128xf32>
    %c6_i32_48 = arith.constant 6 : i32
    %292 = vector.broadcast %c6_i32_48 : i32 to vector<8x128xi32>
    %293 = arith.cmpi eq, %206, %292 : vector<8x128xi32>
    %294 = arith.select %293, %28, %207 : vector<8x128xi1>, vector<8x128xf32>
    %cst_49 = arith.constant dense<0.000000e+00> : vector<128xf32>
    %295 = vector.multi_reduction <add>, %294, %cst_49 [0] : vector<8x128xf32> to vector<128xf32>
    %296 = vector.shape_cast %295 : vector<128xf32> to vector<1x128xf32>
    %297 = arith.subf %291, %296 : vector<1x128xf32>
    %298 = arith.mulf %297, %297 : vector<1x128xf32>
    %299 = arith.addf %286, %298 : vector<1x128xf32>
    %c7_i32_50 = arith.constant 7 : i32
    %300 = vector.broadcast %c7_i32_50 : i32 to vector<8x128xi32>
    %301 = arith.cmpi eq, %117, %300 : vector<8x128xi32>
    %302 = arith.select %301, %27, %207 : vector<8x128xi1>, vector<8x128xf32>
    %cst_51 = arith.constant dense<0.000000e+00> : vector<128xf32>
    %303 = vector.multi_reduction <add>, %302, %cst_51 [0] : vector<8x128xf32> to vector<128xf32>
    %304 = vector.shape_cast %303 : vector<128xf32> to vector<1x128xf32>
    %c7_i32_52 = arith.constant 7 : i32
    %305 = vector.broadcast %c7_i32_52 : i32 to vector<8x128xi32>
    %306 = arith.cmpi eq, %206, %305 : vector<8x128xi32>
    %307 = arith.select %306, %28, %207 : vector<8x128xi1>, vector<8x128xf32>
    %cst_53 = arith.constant dense<0.000000e+00> : vector<128xf32>
    %308 = vector.multi_reduction <add>, %307, %cst_53 [0] : vector<8x128xf32> to vector<128xf32>
    %309 = vector.shape_cast %308 : vector<128xf32> to vector<1x128xf32>
    %310 = arith.subf %304, %309 : vector<1x128xf32>
    %311 = arith.mulf %310, %310 : vector<1x128xf32>
    %312 = arith.addf %299, %311 : vector<1x128xf32>
    %c2_i32_54 = arith.constant 2 : i32
    %313 = arith.muli %arg0, %c2_i32_54 : i32
    %c1_i32_55 = arith.constant 1 : i32
    %314 = arith.addi %313, %c1_i32_55 : i32
    %315 = arith.index_cast %314 : i32 to index
    %316 = memref.load %arg1[%315] : memref<4xi32, #tpu.memory_space<smem>>
    %317 = arith.index_cast %316 : i32 to index
    %c0_56 = arith.constant 0 : index
    %c0_57 = arith.constant 0 : index
    %318 = vector.load %arg3[%317, %c0_56, %c0_57] : memref<3x8x32xf32, #tpu.memory_space<vmem>>, vector<1x8x32xf32>
    %319 = vector.shape_cast %318 : vector<1x8x32xf32> to vector<8x32xf32>
    %320 = arith.index_cast %314 : i32 to index
    %321 = memref.load %arg2[%320] : memref<4xi32, #tpu.memory_space<smem>>
    %322 = arith.index_cast %321 : i32 to index
    %c0_58 = arith.constant 0 : index
    %c0_59 = arith.constant 0 : index
    %323 = vector.load %arg3[%322, %c0_58, %c0_59] : memref<3x8x32xf32, #tpu.memory_space<vmem>>, vector<1x8x32xf32>
    %324 = vector.shape_cast %323 : vector<1x8x32xf32> to vector<8x32xf32>
    %c1 = arith.constant 1 : index
    %c0_60 = arith.constant 0 : index
    %c0_61 = arith.constant 0 : index
    %325 = vector.load %arg4[%c1, %c0_60, %c0_61] : memref<2x32x128xf32, #tpu.memory_space<vmem>>, vector<1x32x128xf32>
    %326 = vector.shape_cast %325 : vector<1x32x128xf32> to vector<32x128xf32>
    %327 = arith.mulf %326, %326 : vector<32x128xf32>
    %cst_62 = arith.constant dense<0.000000e+00> : vector<128xf32>
    %328 = vector.multi_reduction <add>, %327, %cst_62 [0] : vector<32x128xf32> to vector<128xf32>
    %329 = vector.shape_cast %328 : vector<128xf32> to vector<1x128xf32>
    %cst_63 = arith.constant 1.000000e-24 : f32
    %330 = vector.broadcast %cst_63 : f32 to vector<1x128xf32>
    %331 = arith.maximumf %329, %330 : vector<1x128xf32>
    %332 = math.rsqrt %331 : vector<1x128xf32>
    %333 = tpu.concatenate %319, %324 in 0 : vector<8x32xf32>, vector<8x32xf32> -> vector<16x32xf32>
    %334 = arith.truncf %333 : vector<16x32xf32> to vector<16x32xbf16>
    %335 = arith.truncf %326 : vector<32x128xf32> to vector<32x128xbf16>
    %cst_64 = arith.constant dense<0.000000e+00> : vector<16x128xf32>
    %336 = tpu.matmul %334, %335, %cst_64 {dimension_numbers = #tpu.dot_dimension_numbers<[1], [0], [0], [1], [0, 0, 1, 1], [], []>} : vector<16x32xbf16>, vector<32x128xbf16>, vector<16x128xf32> -> vector<16x128xf32>
    %337 = vector.broadcast %332 : vector<1x128xf32> to vector<16x128xf32>
    %338 = arith.mulf %336, %337 : vector<16x128xf32>
    %339 = vector.extract_strided_slice %338 {offsets = [0, 0], sizes = [8, 128], strides = [1, 1]} : vector<16x128xf32> to vector<8x128xf32>
    %340 = vector.extract_strided_slice %338 {offsets = [8, 0], sizes = [8, 128], strides = [1, 1]} : vector<16x128xf32> to vector<8x128xf32>
    %c0_i32_65 = arith.constant 0 : i32
    %341 = vector.broadcast %c0_i32_65 : i32 to vector<8x128xi32>
    %342 = vector.extract_strided_slice %339 {offsets = [0, 0], sizes = [1, 128], strides = [1, 1]} : vector<8x128xf32> to vector<1x128xf32>
    %343 = vector.broadcast %342 : vector<1x128xf32> to vector<8x128xf32>
    %344 = arith.cmpf olt, %343, %339 : vector<8x128xf32>
    %345 = vector.broadcast %342 : vector<1x128xf32> to vector<8x128xf32>
    %346 = arith.cmpf oeq, %345, %339 : vector<8x128xf32>
    %c0_i32_66 = arith.constant 0 : i32
    %347 = vector.broadcast %c0_i32_66 : i32 to vector<8x128xi32>
    %348 = arith.cmpi sgt, %0, %347 : vector<8x128xi32>
    %349 = arith.andi %346, %348 : vector<8x128xi1>
    %350 = arith.ori %344, %349 : vector<8x128xi1>
    %351 = arith.extui %350 : vector<8x128xi1> to vector<8x128xi32>
    %352 = arith.addi %341, %351 : vector<8x128xi32>
    %353 = vector.extract_strided_slice %339 {offsets = [1, 0], sizes = [1, 128], strides = [1, 1]} : vector<8x128xf32> to vector<1x128xf32>
    %354 = vector.broadcast %353 : vector<1x128xf32> to vector<8x128xf32>
    %355 = arith.cmpf olt, %354, %339 : vector<8x128xf32>
    %356 = vector.broadcast %353 : vector<1x128xf32> to vector<8x128xf32>
    %357 = arith.cmpf oeq, %356, %339 : vector<8x128xf32>
    %c1_i32_67 = arith.constant 1 : i32
    %358 = vector.broadcast %c1_i32_67 : i32 to vector<8x128xi32>
    %359 = arith.cmpi sgt, %0, %358 : vector<8x128xi32>
    %360 = arith.andi %357, %359 : vector<8x128xi1>
    %361 = arith.ori %355, %360 : vector<8x128xi1>
    %362 = arith.extui %361 : vector<8x128xi1> to vector<8x128xi32>
    %363 = arith.addi %352, %362 : vector<8x128xi32>
    %364 = vector.extract_strided_slice %339 {offsets = [2, 0], sizes = [1, 128], strides = [1, 1]} : vector<8x128xf32> to vector<1x128xf32>
    %365 = vector.broadcast %364 : vector<1x128xf32> to vector<8x128xf32>
    %366 = arith.cmpf olt, %365, %339 : vector<8x128xf32>
    %367 = vector.broadcast %364 : vector<1x128xf32> to vector<8x128xf32>
    %368 = arith.cmpf oeq, %367, %339 : vector<8x128xf32>
    %c2_i32_68 = arith.constant 2 : i32
    %369 = vector.broadcast %c2_i32_68 : i32 to vector<8x128xi32>
    %370 = arith.cmpi sgt, %0, %369 : vector<8x128xi32>
    %371 = arith.andi %368, %370 : vector<8x128xi1>
    %372 = arith.ori %366, %371 : vector<8x128xi1>
    %373 = arith.extui %372 : vector<8x128xi1> to vector<8x128xi32>
    %374 = arith.addi %363, %373 : vector<8x128xi32>
    %375 = vector.extract_strided_slice %339 {offsets = [3, 0], sizes = [1, 128], strides = [1, 1]} : vector<8x128xf32> to vector<1x128xf32>
    %376 = vector.broadcast %375 : vector<1x128xf32> to vector<8x128xf32>
    %377 = arith.cmpf olt, %376, %339 : vector<8x128xf32>
    %378 = vector.broadcast %375 : vector<1x128xf32> to vector<8x128xf32>
    %379 = arith.cmpf oeq, %378, %339 : vector<8x128xf32>
    %c3_i32_69 = arith.constant 3 : i32
    %380 = vector.broadcast %c3_i32_69 : i32 to vector<8x128xi32>
    %381 = arith.cmpi sgt, %0, %380 : vector<8x128xi32>
    %382 = arith.andi %379, %381 : vector<8x128xi1>
    %383 = arith.ori %377, %382 : vector<8x128xi1>
    %384 = arith.extui %383 : vector<8x128xi1> to vector<8x128xi32>
    %385 = arith.addi %374, %384 : vector<8x128xi32>
    %386 = vector.extract_strided_slice %339 {offsets = [4, 0], sizes = [1, 128], strides = [1, 1]} : vector<8x128xf32> to vector<1x128xf32>
    %387 = vector.broadcast %386 : vector<1x128xf32> to vector<8x128xf32>
    %388 = arith.cmpf olt, %387, %339 : vector<8x128xf32>
    %389 = vector.broadcast %386 : vector<1x128xf32> to vector<8x128xf32>
    %390 = arith.cmpf oeq, %389, %339 : vector<8x128xf32>
    %c4_i32_70 = arith.constant 4 : i32
    %391 = vector.broadcast %c4_i32_70 : i32 to vector<8x128xi32>
    %392 = arith.cmpi sgt, %0, %391 : vector<8x128xi32>
    %393 = arith.andi %390, %392 : vector<8x128xi1>
    %394 = arith.ori %388, %393 : vector<8x128xi1>
    %395 = arith.extui %394 : vector<8x128xi1> to vector<8x128xi32>
    %396 = arith.addi %385, %395 : vector<8x128xi32>
    %397 = vector.extract_strided_slice %339 {offsets = [5, 0], sizes = [1, 128], strides = [1, 1]} : vector<8x128xf32> to vector<1x128xf32>
    %398 = vector.broadcast %397 : vector<1x128xf32> to vector<8x128xf32>
    %399 = arith.cmpf olt, %398, %339 : vector<8x128xf32>
    %400 = vector.broadcast %397 : vector<1x128xf32> to vector<8x128xf32>
    %401 = arith.cmpf oeq, %400, %339 : vector<8x128xf32>
    %c5_i32_71 = arith.constant 5 : i32
    %402 = vector.broadcast %c5_i32_71 : i32 to vector<8x128xi32>
    %403 = arith.cmpi sgt, %0, %402 : vector<8x128xi32>
    %404 = arith.andi %401, %403 : vector<8x128xi1>
    %405 = arith.ori %399, %404 : vector<8x128xi1>
    %406 = arith.extui %405 : vector<8x128xi1> to vector<8x128xi32>
    %407 = arith.addi %396, %406 : vector<8x128xi32>
    %408 = vector.extract_strided_slice %339 {offsets = [6, 0], sizes = [1, 128], strides = [1, 1]} : vector<8x128xf32> to vector<1x128xf32>
    %409 = vector.broadcast %408 : vector<1x128xf32> to vector<8x128xf32>
    %410 = arith.cmpf olt, %409, %339 : vector<8x128xf32>
    %411 = vector.broadcast %408 : vector<1x128xf32> to vector<8x128xf32>
    %412 = arith.cmpf oeq, %411, %339 : vector<8x128xf32>
    %c6_i32_72 = arith.constant 6 : i32
    %413 = vector.broadcast %c6_i32_72 : i32 to vector<8x128xi32>
    %414 = arith.cmpi sgt, %0, %413 : vector<8x128xi32>
    %415 = arith.andi %412, %414 : vector<8x128xi1>
    %416 = arith.ori %410, %415 : vector<8x128xi1>
    %417 = arith.extui %416 : vector<8x128xi1> to vector<8x128xi32>
    %418 = arith.addi %407, %417 : vector<8x128xi32>
    %419 = vector.extract_strided_slice %339 {offsets = [7, 0], sizes = [1, 128], strides = [1, 1]} : vector<8x128xf32> to vector<1x128xf32>
    %420 = vector.broadcast %419 : vector<1x128xf32> to vector<8x128xf32>
    %421 = arith.cmpf olt, %420, %339 : vector<8x128xf32>
    %422 = vector.broadcast %419 : vector<1x128xf32> to vector<8x128xf32>
    %423 = arith.cmpf oeq, %422, %339 : vector<8x128xf32>
    %c7_i32_73 = arith.constant 7 : i32
    %424 = vector.broadcast %c7_i32_73 : i32 to vector<8x128xi32>
    %425 = arith.cmpi sgt, %0, %424 : vector<8x128xi32>
    %426 = arith.andi %423, %425 : vector<8x128xi1>
    %427 = arith.ori %421, %426 : vector<8x128xi1>
    %428 = arith.extui %427 : vector<8x128xi1> to vector<8x128xi32>
    %429 = arith.addi %418, %428 : vector<8x128xi32>
    %c0_i32_74 = arith.constant 0 : i32
    %430 = vector.broadcast %c0_i32_74 : i32 to vector<8x128xi32>
    %431 = vector.extract_strided_slice %340 {offsets = [0, 0], sizes = [1, 128], strides = [1, 1]} : vector<8x128xf32> to vector<1x128xf32>
    %432 = vector.broadcast %431 : vector<1x128xf32> to vector<8x128xf32>
    %433 = arith.cmpf olt, %432, %340 : vector<8x128xf32>
    %434 = vector.broadcast %431 : vector<1x128xf32> to vector<8x128xf32>
    %435 = arith.cmpf oeq, %434, %340 : vector<8x128xf32>
    %c0_i32_75 = arith.constant 0 : i32
    %436 = vector.broadcast %c0_i32_75 : i32 to vector<8x128xi32>
    %437 = arith.cmpi sgt, %0, %436 : vector<8x128xi32>
    %438 = arith.andi %435, %437 : vector<8x128xi1>
    %439 = arith.ori %433, %438 : vector<8x128xi1>
    %440 = arith.extui %439 : vector<8x128xi1> to vector<8x128xi32>
    %441 = arith.addi %430, %440 : vector<8x128xi32>
    %442 = vector.extract_strided_slice %340 {offsets = [1, 0], sizes = [1, 128], strides = [1, 1]} : vector<8x128xf32> to vector<1x128xf32>
    %443 = vector.broadcast %442 : vector<1x128xf32> to vector<8x128xf32>
    %444 = arith.cmpf olt, %443, %340 : vector<8x128xf32>
    %445 = vector.broadcast %442 : vector<1x128xf32> to vector<8x128xf32>
    %446 = arith.cmpf oeq, %445, %340 : vector<8x128xf32>
    %c1_i32_76 = arith.constant 1 : i32
    %447 = vector.broadcast %c1_i32_76 : i32 to vector<8x128xi32>
    %448 = arith.cmpi sgt, %0, %447 : vector<8x128xi32>
    %449 = arith.andi %446, %448 : vector<8x128xi1>
    %450 = arith.ori %444, %449 : vector<8x128xi1>
    %451 = arith.extui %450 : vector<8x128xi1> to vector<8x128xi32>
    %452 = arith.addi %441, %451 : vector<8x128xi32>
    %453 = vector.extract_strided_slice %340 {offsets = [2, 0], sizes = [1, 128], strides = [1, 1]} : vector<8x128xf32> to vector<1x128xf32>
    %454 = vector.broadcast %453 : vector<1x128xf32> to vector<8x128xf32>
    %455 = arith.cmpf olt, %454, %340 : vector<8x128xf32>
    %456 = vector.broadcast %453 : vector<1x128xf32> to vector<8x128xf32>
    %457 = arith.cmpf oeq, %456, %340 : vector<8x128xf32>
    %c2_i32_77 = arith.constant 2 : i32
    %458 = vector.broadcast %c2_i32_77 : i32 to vector<8x128xi32>
    %459 = arith.cmpi sgt, %0, %458 : vector<8x128xi32>
    %460 = arith.andi %457, %459 : vector<8x128xi1>
    %461 = arith.ori %455, %460 : vector<8x128xi1>
    %462 = arith.extui %461 : vector<8x128xi1> to vector<8x128xi32>
    %463 = arith.addi %452, %462 : vector<8x128xi32>
    %464 = vector.extract_strided_slice %340 {offsets = [3, 0], sizes = [1, 128], strides = [1, 1]} : vector<8x128xf32> to vector<1x128xf32>
    %465 = vector.broadcast %464 : vector<1x128xf32> to vector<8x128xf32>
    %466 = arith.cmpf olt, %465, %340 : vector<8x128xf32>
    %467 = vector.broadcast %464 : vector<1x128xf32> to vector<8x128xf32>
    %468 = arith.cmpf oeq, %467, %340 : vector<8x128xf32>
    %c3_i32_78 = arith.constant 3 : i32
    %469 = vector.broadcast %c3_i32_78 : i32 to vector<8x128xi32>
    %470 = arith.cmpi sgt, %0, %469 : vector<8x128xi32>
    %471 = arith.andi %468, %470 : vector<8x128xi1>
    %472 = arith.ori %466, %471 : vector<8x128xi1>
    %473 = arith.extui %472 : vector<8x128xi1> to vector<8x128xi32>
    %474 = arith.addi %463, %473 : vector<8x128xi32>
    %475 = vector.extract_strided_slice %340 {offsets = [4, 0], sizes = [1, 128], strides = [1, 1]} : vector<8x128xf32> to vector<1x128xf32>
    %476 = vector.broadcast %475 : vector<1x128xf32> to vector<8x128xf32>
    %477 = arith.cmpf olt, %476, %340 : vector<8x128xf32>
    %478 = vector.broadcast %475 : vector<1x128xf32> to vector<8x128xf32>
    %479 = arith.cmpf oeq, %478, %340 : vector<8x128xf32>
    %c4_i32_79 = arith.constant 4 : i32
    %480 = vector.broadcast %c4_i32_79 : i32 to vector<8x128xi32>
    %481 = arith.cmpi sgt, %0, %480 : vector<8x128xi32>
    %482 = arith.andi %479, %481 : vector<8x128xi1>
    %483 = arith.ori %477, %482 : vector<8x128xi1>
    %484 = arith.extui %483 : vector<8x128xi1> to vector<8x128xi32>
    %485 = arith.addi %474, %484 : vector<8x128xi32>
    %486 = vector.extract_strided_slice %340 {offsets = [5, 0], sizes = [1, 128], strides = [1, 1]} : vector<8x128xf32> to vector<1x128xf32>
    %487 = vector.broadcast %486 : vector<1x128xf32> to vector<8x128xf32>
    %488 = arith.cmpf olt, %487, %340 : vector<8x128xf32>
    %489 = vector.broadcast %486 : vector<1x128xf32> to vector<8x128xf32>
    %490 = arith.cmpf oeq, %489, %340 : vector<8x128xf32>
    %c5_i32_80 = arith.constant 5 : i32
    %491 = vector.broadcast %c5_i32_80 : i32 to vector<8x128xi32>
    %492 = arith.cmpi sgt, %0, %491 : vector<8x128xi32>
    %493 = arith.andi %490, %492 : vector<8x128xi1>
    %494 = arith.ori %488, %493 : vector<8x128xi1>
    %495 = arith.extui %494 : vector<8x128xi1> to vector<8x128xi32>
    %496 = arith.addi %485, %495 : vector<8x128xi32>
    %497 = vector.extract_strided_slice %340 {offsets = [6, 0], sizes = [1, 128], strides = [1, 1]} : vector<8x128xf32> to vector<1x128xf32>
    %498 = vector.broadcast %497 : vector<1x128xf32> to vector<8x128xf32>
    %499 = arith.cmpf olt, %498, %340 : vector<8x128xf32>
    %500 = vector.broadcast %497 : vector<1x128xf32> to vector<8x128xf32>
    %501 = arith.cmpf oeq, %500, %340 : vector<8x128xf32>
    %c6_i32_81 = arith.constant 6 : i32
    %502 = vector.broadcast %c6_i32_81 : i32 to vector<8x128xi32>
    %503 = arith.cmpi sgt, %0, %502 : vector<8x128xi32>
    %504 = arith.andi %501, %503 : vector<8x128xi1>
    %505 = arith.ori %499, %504 : vector<8x128xi1>
    %506 = arith.extui %505 : vector<8x128xi1> to vector<8x128xi32>
    %507 = arith.addi %496, %506 : vector<8x128xi32>
    %508 = vector.extract_strided_slice %340 {offsets = [7, 0], sizes = [1, 128], strides = [1, 1]} : vector<8x128xf32> to vector<1x128xf32>
    %509 = vector.broadcast %508 : vector<1x128xf32> to vector<8x128xf32>
    %510 = arith.cmpf olt, %509, %340 : vector<8x128xf32>
    %511 = vector.broadcast %508 : vector<1x128xf32> to vector<8x128xf32>
    %512 = arith.cmpf oeq, %511, %340 : vector<8x128xf32>
    %c7_i32_82 = arith.constant 7 : i32
    %513 = vector.broadcast %c7_i32_82 : i32 to vector<8x128xi32>
    %514 = arith.cmpi sgt, %0, %513 : vector<8x128xi32>
    %515 = arith.andi %512, %514 : vector<8x128xi1>
    %516 = arith.ori %510, %515 : vector<8x128xi1>
    %517 = arith.extui %516 : vector<8x128xi1> to vector<8x128xi32>
    %518 = arith.addi %507, %517 : vector<8x128xi32>
    %cst_83 = arith.constant 0.000000e+00 : f32
    %519 = vector.broadcast %cst_83 : f32 to vector<8x128xf32>
    %cst_84 = arith.constant 0.000000e+00 : f32
    %520 = vector.broadcast %cst_84 : f32 to vector<1x128xf32>
    %c0_i32_85 = arith.constant 0 : i32
    %521 = vector.broadcast %c0_i32_85 : i32 to vector<8x128xi32>
    %522 = arith.cmpi eq, %429, %521 : vector<8x128xi32>
    %523 = arith.select %522, %339, %519 : vector<8x128xi1>, vector<8x128xf32>
    %cst_86 = arith.constant dense<0.000000e+00> : vector<128xf32>
    %524 = vector.multi_reduction <add>, %523, %cst_86 [0] : vector<8x128xf32> to vector<128xf32>
    %525 = vector.shape_cast %524 : vector<128xf32> to vector<1x128xf32>
    %c0_i32_87 = arith.constant 0 : i32
    %526 = vector.broadcast %c0_i32_87 : i32 to vector<8x128xi32>
    %527 = arith.cmpi eq, %518, %526 : vector<8x128xi32>
    %528 = arith.select %527, %340, %519 : vector<8x128xi1>, vector<8x128xf32>
    %cst_88 = arith.constant dense<0.000000e+00> : vector<128xf32>
    %529 = vector.multi_reduction <add>, %528, %cst_88 [0] : vector<8x128xf32> to vector<128xf32>
    %530 = vector.shape_cast %529 : vector<128xf32> to vector<1x128xf32>
    %531 = arith.subf %525, %530 : vector<1x128xf32>
    %532 = arith.mulf %531, %531 : vector<1x128xf32>
    %533 = arith.addf %520, %532 : vector<1x128xf32>
    %c1_i32_89 = arith.constant 1 : i32
    %534 = vector.broadcast %c1_i32_89 : i32 to vector<8x128xi32>
    %535 = arith.cmpi eq, %429, %534 : vector<8x128xi32>
    %536 = arith.select %535, %339, %519 : vector<8x128xi1>, vector<8x128xf32>
    %cst_90 = arith.constant dense<0.000000e+00> : vector<128xf32>
    %537 = vector.multi_reduction <add>, %536, %cst_90 [0] : vector<8x128xf32> to vector<128xf32>
    %538 = vector.shape_cast %537 : vector<128xf32> to vector<1x128xf32>
    %c1_i32_91 = arith.constant 1 : i32
    %539 = vector.broadcast %c1_i32_91 : i32 to vector<8x128xi32>
    %540 = arith.cmpi eq, %518, %539 : vector<8x128xi32>
    %541 = arith.select %540, %340, %519 : vector<8x128xi1>, vector<8x128xf32>
    %cst_92 = arith.constant dense<0.000000e+00> : vector<128xf32>
    %542 = vector.multi_reduction <add>, %541, %cst_92 [0] : vector<8x128xf32> to vector<128xf32>
    %543 = vector.shape_cast %542 : vector<128xf32> to vector<1x128xf32>
    %544 = arith.subf %538, %543 : vector<1x128xf32>
    %545 = arith.mulf %544, %544 : vector<1x128xf32>
    %546 = arith.addf %533, %545 : vector<1x128xf32>
    %c2_i32_93 = arith.constant 2 : i32
    %547 = vector.broadcast %c2_i32_93 : i32 to vector<8x128xi32>
    %548 = arith.cmpi eq, %429, %547 : vector<8x128xi32>
    %549 = arith.select %548, %339, %519 : vector<8x128xi1>, vector<8x128xf32>
    %cst_94 = arith.constant dense<0.000000e+00> : vector<128xf32>
    %550 = vector.multi_reduction <add>, %549, %cst_94 [0] : vector<8x128xf32> to vector<128xf32>
    %551 = vector.shape_cast %550 : vector<128xf32> to vector<1x128xf32>
    %c2_i32_95 = arith.constant 2 : i32
    %552 = vector.broadcast %c2_i32_95 : i32 to vector<8x128xi32>
    %553 = arith.cmpi eq, %518, %552 : vector<8x128xi32>
    %554 = arith.select %553, %340, %519 : vector<8x128xi1>, vector<8x128xf32>
    %cst_96 = arith.constant dense<0.000000e+00> : vector<128xf32>
    %555 = vector.multi_reduction <add>, %554, %cst_96 [0] : vector<8x128xf32> to vector<128xf32>
    %556 = vector.shape_cast %555 : vector<128xf32> to vector<1x128xf32>
    %557 = arith.subf %551, %556 : vector<1x128xf32>
    %558 = arith.mulf %557, %557 : vector<1x128xf32>
    %559 = arith.addf %546, %558 : vector<1x128xf32>
    %c3_i32_97 = arith.constant 3 : i32
    %560 = vector.broadcast %c3_i32_97 : i32 to vector<8x128xi32>
    %561 = arith.cmpi eq, %429, %560 : vector<8x128xi32>
    %562 = arith.select %561, %339, %519 : vector<8x128xi1>, vector<8x128xf32>
    %cst_98 = arith.constant dense<0.000000e+00> : vector<128xf32>
    %563 = vector.multi_reduction <add>, %562, %cst_98 [0] : vector<8x128xf32> to vector<128xf32>
    %564 = vector.shape_cast %563 : vector<128xf32> to vector<1x128xf32>
    %c3_i32_99 = arith.constant 3 : i32
    %565 = vector.broadcast %c3_i32_99 : i32 to vector<8x128xi32>
    %566 = arith.cmpi eq, %518, %565 : vector<8x128xi32>
    %567 = arith.select %566, %340, %519 : vector<8x128xi1>, vector<8x128xf32>
    %cst_100 = arith.constant dense<0.000000e+00> : vector<128xf32>
    %568 = vector.multi_reduction <add>, %567, %cst_100 [0] : vector<8x128xf32> to vector<128xf32>
    %569 = vector.shape_cast %568 : vector<128xf32> to vector<1x128xf32>
    %570 = arith.subf %564, %569 : vector<1x128xf32>
    %571 = arith.mulf %570, %570 : vector<1x128xf32>
    %572 = arith.addf %559, %571 : vector<1x128xf32>
    %c4_i32_101 = arith.constant 4 : i32
    %573 = vector.broadcast %c4_i32_101 : i32 to vector<8x128xi32>
    %574 = arith.cmpi eq, %429, %573 : vector<8x128xi32>
    %575 = arith.select %574, %339, %519 : vector<8x128xi1>, vector<8x128xf32>
    %cst_102 = arith.constant dense<0.000000e+00> : vector<128xf32>
    %576 = vector.multi_reduction <add>, %575, %cst_102 [0] : vector<8x128xf32> to vector<128xf32>
    %577 = vector.shape_cast %576 : vector<128xf32> to vector<1x128xf32>
    %c4_i32_103 = arith.constant 4 : i32
    %578 = vector.broadcast %c4_i32_103 : i32 to vector<8x128xi32>
    %579 = arith.cmpi eq, %518, %578 : vector<8x128xi32>
    %580 = arith.select %579, %340, %519 : vector<8x128xi1>, vector<8x128xf32>
    %cst_104 = arith.constant dense<0.000000e+00> : vector<128xf32>
    %581 = vector.multi_reduction <add>, %580, %cst_104 [0] : vector<8x128xf32> to vector<128xf32>
    %582 = vector.shape_cast %581 : vector<128xf32> to vector<1x128xf32>
    %583 = arith.subf %577, %582 : vector<1x128xf32>
    %584 = arith.mulf %583, %583 : vector<1x128xf32>
    %585 = arith.addf %572, %584 : vector<1x128xf32>
    %c5_i32_105 = arith.constant 5 : i32
    %586 = vector.broadcast %c5_i32_105 : i32 to vector<8x128xi32>
    %587 = arith.cmpi eq, %429, %586 : vector<8x128xi32>
    %588 = arith.select %587, %339, %519 : vector<8x128xi1>, vector<8x128xf32>
    %cst_106 = arith.constant dense<0.000000e+00> : vector<128xf32>
    %589 = vector.multi_reduction <add>, %588, %cst_106 [0] : vector<8x128xf32> to vector<128xf32>
    %590 = vector.shape_cast %589 : vector<128xf32> to vector<1x128xf32>
    %c5_i32_107 = arith.constant 5 : i32
    %591 = vector.broadcast %c5_i32_107 : i32 to vector<8x128xi32>
    %592 = arith.cmpi eq, %518, %591 : vector<8x128xi32>
    %593 = arith.select %592, %340, %519 : vector<8x128xi1>, vector<8x128xf32>
    %cst_108 = arith.constant dense<0.000000e+00> : vector<128xf32>
    %594 = vector.multi_reduction <add>, %593, %cst_108 [0] : vector<8x128xf32> to vector<128xf32>
    %595 = vector.shape_cast %594 : vector<128xf32> to vector<1x128xf32>
    %596 = arith.subf %590, %595 : vector<1x128xf32>
    %597 = arith.mulf %596, %596 : vector<1x128xf32>
    %598 = arith.addf %585, %597 : vector<1x128xf32>
    %c6_i32_109 = arith.constant 6 : i32
    %599 = vector.broadcast %c6_i32_109 : i32 to vector<8x128xi32>
    %600 = arith.cmpi eq, %429, %599 : vector<8x128xi32>
    %601 = arith.select %600, %339, %519 : vector<8x128xi1>, vector<8x128xf32>
    %cst_110 = arith.constant dense<0.000000e+00> : vector<128xf32>
    %602 = vector.multi_reduction <add>, %601, %cst_110 [0] : vector<8x128xf32> to vector<128xf32>
    %603 = vector.shape_cast %602 : vector<128xf32> to vector<1x128xf32>
    %c6_i32_111 = arith.constant 6 : i32
    %604 = vector.broadcast %c6_i32_111 : i32 to vector<8x128xi32>
    %605 = arith.cmpi eq, %518, %604 : vector<8x128xi32>
    %606 = arith.select %605, %340, %519 : vector<8x128xi1>, vector<8x128xf32>
    %cst_112 = arith.constant dense<0.000000e+00> : vector<128xf32>
    %607 = vector.multi_reduction <add>, %606, %cst_112 [0] : vector<8x128xf32> to vector<128xf32>
    %608 = vector.shape_cast %607 : vector<128xf32> to vector<1x128xf32>
    %609 = arith.subf %603, %608 : vector<1x128xf32>
    %610 = arith.mulf %609, %609 : vector<1x128xf32>
    %611 = arith.addf %598, %610 : vector<1x128xf32>
    %c7_i32_113 = arith.constant 7 : i32
    %612 = vector.broadcast %c7_i32_113 : i32 to vector<8x128xi32>
    %613 = arith.cmpi eq, %429, %612 : vector<8x128xi32>
    %614 = arith.select %613, %339, %519 : vector<8x128xi1>, vector<8x128xf32>
    %cst_114 = arith.constant dense<0.000000e+00> : vector<128xf32>
    %615 = vector.multi_reduction <add>, %614, %cst_114 [0] : vector<8x128xf32> to vector<128xf32>
    %616 = vector.shape_cast %615 : vector<128xf32> to vector<1x128xf32>
    %c7_i32_115 = arith.constant 7 : i32
    %617 = vector.broadcast %c7_i32_115 : i32 to vector<8x128xi32>
    %618 = arith.cmpi eq, %518, %617 : vector<8x128xi32>
    %619 = arith.select %618, %340, %519 : vector<8x128xi1>, vector<8x128xf32>
    %cst_116 = arith.constant dense<0.000000e+00> : vector<128xf32>
    %620 = vector.multi_reduction <add>, %619, %cst_116 [0] : vector<8x128xf32> to vector<128xf32>
    %621 = vector.shape_cast %620 : vector<128xf32> to vector<1x128xf32>
    %622 = arith.subf %616, %621 : vector<1x128xf32>
    %623 = arith.mulf %622, %622 : vector<1x128xf32>
    %624 = arith.addf %611, %623 : vector<1x128xf32>
    %625 = tpu.concatenate %312, %624 in 0 : vector<1x128xf32>, vector<1x128xf32> -> vector<2x128xf32>
    %c0_117 = arith.constant 0 : index
    %c0_118 = arith.constant 0 : index
    %c0_119 = arith.constant 0 : index
    %626 = vector.load %arg5[%c0_117, %c0_118, %c0_119] : memref<1x2x128xf32, #tpu.memory_space<vmem>>, vector<1x2x128xf32>
    %627 = vector.shape_cast %626 : vector<1x2x128xf32> to vector<2x128xf32>
    %628 = vector.shape_cast %625 : vector<2x128xf32> to vector<1x2x128xf32>
    tpu.vector_store %arg5[%c0_117, %c0_118, %c0_119], %628 {strides = array<i32>} : memref<1x2x128xf32, #tpu.memory_space<vmem>>, vector<1x2x128xf32>,
    return
  }
  func.func @transform_0(%arg0: i32, %arg1: memref<4xi32, #tpu.memory_space<smem>>, %arg2: memref<4xi32, #tpu.memory_space<smem>>) -> (i32, i32, i32) {
    %c0_i32 = arith.constant 0 : i32
    %c0_i32_0 = arith.constant 0 : i32
    %c0_i32_1 = arith.constant 0 : i32
    %c0_i32_2 = arith.constant 0 : i32
    return %c0_i32, %c0_i32_0, %c0_i32_1 : i32, i32, i32
  }
  func.func @transform_1(%arg0: i32, %arg1: memref<4xi32, #tpu.memory_space<smem>>, %arg2: memref<4xi32, #tpu.memory_space<smem>>) -> (i32, i32, i32) {
    %c0_i32 = arith.constant 0 : i32
    %c0_i32_0 = arith.constant 0 : i32
    %c0_i32_1 = arith.constant 0 : i32
    return %arg0, %c0_i32, %c0_i32_0 : i32, i32, i32
  }
  func.func @transform_2(%arg0: i32, %arg1: memref<4xi32, #tpu.memory_space<smem>>, %arg2: memref<4xi32, #tpu.memory_space<smem>>) -> (i32, i32, i32) {
    %c0_i32 = arith.constant 0 : i32
    %c0_i32_0 = arith.constant 0 : i32
    %c0_i32_1 = arith.constant 0 : i32
    return %arg0, %c0_i32, %c0_i32_0 : i32, i32, i32
  }
}

</mosaic_0001>

<bundles_post_ra>
// kernel: sliced_wasserstein_layer_regularizer.1
= control target key start
LH: loop header
LB: loop body
LE: loop exit
PB: predicated region body
PF: predicated region fallthrough
CT: control target
= control target key end

     0   :  { %s1878_s0 = inlined_call_operand.vmem [shape: s32[4], index: 0, kind: input, shape index: {}]   ;;  %s1879_s2 = inlined_call_operand.vmem [shape: f32[3,8,32], index: 2, kind: input, shape index: {}]   ;;  %s1880_s3 = inlined_call_operand.vmem [shape: f32[4,32,128], index: 3, kind: input, shape index: {}]   ;;  %s1881_s4 = inlined_call_operand.vmem [shape: f32[2,2,128], index: 4, kind: output, shape index: {}]   ;;  %s1882_s1 = inlined_call_operand.vmem [shape: s32[4], index: 1, kind: input, shape index: {}]  }
   0x1   :  { %s9_s17 = sshll.u32 %s1878_s0, 4  ;;  %s13_s20 = sshll.u32 %s1882_s1, 4  ;;  %s10_s17 = int_to_ptr.vmem [resolvable:$true] %s9_s17  ;;  %s14_s20 = int_to_ptr.vmem [resolvable:$true] %s13_s20 }
   0x2   :  { %s1072_s21 = scalar_lea.vmem %s10_s17, 16  ;;  %p1077_p1 = scmp.lt.s32.totalorder %s10_s17, %s10_s17 }
   0x3   :  { %p1073_p0 = scmp.ne.s32.totalorder %s10_s17, %s1072_s21  ;;  %p1078_p2 = scmp.lt.s32.totalorder %s1072_s21, %s1072_s21 }
   0x5   :  { %p1079_p3 = por %p1078_p2, %p1077_p1 }
   0x7   :  { %p1080_p4 = pnand %p1079_p3, %p1073_p0 }
   0x9   :  { %1083 = shalt.err (!%p1080_p4)  }
   0xa   :  { %s1106_s22 = smov [#allocation3]   ;;  %s1084_s23 = scalar_lea.vmem %s14_s20, 16 }
   0xb   :  { %12 = dma.vmem_to_smem %s10_s17, 16, %s1106_s22, [#allocation2] }
   0xc   :  { %p1085_p5 = scmp.ne.s32.totalorder %s14_s20, %s1084_s23  ;;  %p1089_p6 = scmp.lt.s32.totalorder %s14_s20, %s14_s20 }
   0xd   :  { %p1090_p7 = scmp.lt.s32.totalorder %s1084_s23, %s1084_s23 }
   0xf   :  { %p1091_p8 = por %p1090_p7, %p1089_p6 }
  0x11   :  { %p1092_p9 = pnand %p1091_p8, %p1085_p5 }
  0x13   :  { %1095 = shalt.err (!%p1092_p9)  }
  0x14   :  { %s1107_s0 = smov [#allocation4]  }
  0x15   :  { %16 = dma.vmem_to_smem %s14_s20, 16, %s1107_s0, [#allocation2] }
  0x16   :  { %1100 = dma.done.wait [#allocation2], 32 }
  0x17   :  { %1101 = vsyncadd [#allocation2], 4294967264 }
  0x18   :  { %18 = sfence }
  0x19   :  { %s1142_s1 = smov 0  }
  0x1a LB: > { %s1148_s24 = sadd.s32 4294967295, %s1104_s1   ;;  %p1014_p10 = scmp.ge.s32.totalorder %s1104_s1, 1  ;;  %s1104_s1 = sphi %s1142_s1, %s24_s1  }
  0x1b   : > { %p126_p11 = scmp.lt.s32.totalorder %s1104_s1, 3 }
  0x1d   : > { %p127_p12 = pnand %p1014_p10, %p126_p11 }
  0x1e   : > { %s1015_s25 = sshll.u32 (!%p127_p12), %s1148_s24, 1  ;;  %p155_p0 = scmp.lt.s32.totalorder (!%p127_p12), %s1148_s24, 1 }
  0x1f   : > { %130 = sbr.rel (%p127_p12) target bundleno = 379 (0x17b), region = 28  ;;  %p149_p13 = scmp.lt.s32.totalorder (!%p127_p12), %s1015_s25, 3 }
  0x20   : > { %s163_s26 = sld [smem:[#allocation3 + %s1015_s25]] (!%p127_p12)  ;;  %s558_s28 = sadd.s32 (!%p127_p12), 1, %s1015_s25 }
  0x21   : > { %s167_s27 = sld [smem:[#allocation4 + %s1015_s25]] (!%p127_p12) }
  0x22   : > { %s1153_s29 = sld [smem:[#allocation3 + %s558_s28]] (!%p127_p12) }
  0x23   : > { %s1155_s5 = sld [smem:[#allocation4 + %s558_s28]] (!%p127_p12) }
  0x24   : > { %v1108_v0 = vmov 0.0   ;;  %vm1109_vm0 = vmmov 0   ;;  %s1964_s25 = smov (!%p149_p13, %s1015_s25), 3  ;;  %vm193_vm1 = vcmask 261120   ;;  %v160_v47 = vlaneseq  ;;  %s1966_s24 = smov (!%p155_p0, %s1148_s24), 1 }
  0x25   : > { %1039 = vmatprep.subr.bf16.mxu0 %v1108_v0  ;;  %1047 = vmatprep.subr.bf16.mxu1 %v1108_v0  ;;  %s1032_s30 = sshll.u32 %s1964_s25, 5  ;;  %s1018_s25 = sshll.u32 %s1966_s24, 1 }
  0x26   : > { %1043 = vmatprep.mubr.msk.bf16.mxu0 %vm1109_vm0, %v1108_v0  ;;  %1051 = vmatprep.mubr.msk.bf16.mxu1 %vm1109_vm0, %v1108_v0  ;;  %s153_s8 = scalar_lea.vmem %s1880_s3, %s1032_s30  ;;  %s1020_s9 = sshll.u32 %s163_s26, 3  ;;  %v1174_v48 = vshrl.u32 %v160_v47, 7 }
  0x27   : > { %v173_v1 = vld [vmem:[%s153_s8 + $0x10] sm:$0xff]  ;;  %v174_v2 = vld [vmem:[%s153_s8 + $0x18] sm:$0xff]  ;;  %v171_v6 = vld [vmem:[%s153_s8] sm:$0xff]  ;;  %s165_s12 = scalar_lea.vmem %s1879_s2, %s1020_s9  ;;  %s1021_s13 = sshll.u32 %s167_s27, 3 }
  0x28   : > { %v1027_v3 = vld [vmem:[%s153_s8 + $0x30] sm:$0xff]  ;;  %v192_v4 = vpack.c.bf16 %v174_v2, %v173_v1  ;;  %v1028_v5 = vld [vmem:[%s153_s8 + $0x38] sm:$0xff]  ;;  %v172_v7 = vld [vmem:[%s153_s8 + $0x8] sm:$0xff]  ;;  %v177_v8 = vmul.f32 %v173_v1, %v173_v1  ;;  %v175_v10 = vmul.f32 %v171_v6, %v171_v6  ;;  %s169_s16 = scalar_lea.vmem %s1879_s2, %s1021_s13  ;;  %s1023_s17 = sshll.u32 %s1153_s29, 3  ;;  %v178_v20 = vmul.f32 %v174_v2, %v174_v2 }
  0x29   : > { %v589_v9 = vpack.c.bf16 %v1028_v5, %v1027_v3  ;;  %v176_v11 = vmul.f32 %v172_v7, %v172_v7  ;;  %v1025_v12 = vld [vmem:[%s153_s8 + $0x20] sm:$0xff]  ;;  %v1026_v13 = vld [vmem:[%s153_s8 + $0x28] sm:$0xff]  ;;  %v574_v14 = vmul.f32 %v1027_v3, %v1027_v3  ;;  %v191_v15 = vpack.c.bf16 %v172_v7, %v171_v6  ;;  %s561_s20 = scalar_lea.vmem %s1879_s2, %s1023_s17  ;;  %s1024_s21 = sshll.u32 %s1155_s5, 3 }
  0x2a   : > { %1040 = vmatpush3.bf16.msra.mxu0 %v192_v4  ;;  %v572_v16 = vmul.f32 %v1025_v12, %v1025_v12  ;;  %v573_v17 = vmul.f32 %v1026_v13, %v1026_v13  ;;  %v166_v18 = vld [vmem:[%s165_s12] sm:$0xff]  ;;  %v588_v22 = vpack.c.bf16 %v1026_v13, %v1025_v12  ;;  %v575_v23 = vmul.f32 %v1028_v5, %v1028_v5  ;;  %s565_s0 = scalar_lea.vmem %s1879_s2, %s1024_s21  ;;  %s158_s28 = scalar_lea.vmem %s1881_s4, %s1018_s25 }
  0x2b   : > { %v170_v19 = vld [vmem:[%s169_s16] sm:$0xff]  ;;  %1048 = vmatpush3.bf16.msra.mxu1 %v589_v9  ;;  %1041 = vmatprep.subr.bf16.mxu0 %v1108_v0  ;;  %v179_v21 = vadd.f32 %v176_v11, %v175_v10  ;;  %v1181_v51 = vsub.s32 0, %v1174_v48  ;;  %v1184_v52 = vsub.s32 1, %v1174_v48  ;;  %v1187_v53 = vsub.s32 2, %v1174_v48 }
  0x2c   : > { %1049 = vmatprep.subr.bf16.mxu1 %v1108_v0  ;;  %v576_v24 = vadd.f32 %v573_v17, %v572_v16  ;;  %v562_v25 = vld [vmem:[%s561_s20] sm:$0xff]  ;;  %v190_v27 = vpack.c.bf16 %v170_v19, %v166_v18  ;;  %v1193_v56 = vsub.s32 3, %v1174_v48  ;;  %vm1886_vm2 = vcmp.gt.s32.totalorder %v1174_v48, 0 }
  0x2d   : > { %v180_v26 = vadd.f32 %v179_v21, %v177_v8  ;;  %v566_v28 = vld [vmem:[%s565_s0] sm:$0xff]  ;;  %v1206_v63 = vsub.s32 4, %v1174_v48  ;;  %vm1887_vm3 = vcmp.gt.s32.totalorder %v1174_v48, 1  ;;  %v1210_v1 = vsub.s32 5, %v1174_v48 }
  0x2e   : > { %1042 = vmatpush3.bf16.msra.mxu0 %v191_v15  ;;  %v577_v29 = vadd.f32 %v576_v24, %v574_v14  ;;  %v587_v30 = vpack.c.bf16 %v566_v28, %v562_v25  ;;  %vm1883_vm11 = vcmp.gt.s32.totalorder %v1174_v48, 2  ;;  %v1225_v7 = vsub.s32 6, %v1174_v48 }
  0x2f   : > { %v181_v31 = vadd.f32 %v180_v26, %v178_v20  ;;  %1050 = vmatpush3.bf16.msra.mxu1 %v588_v22  ;;  %v1110_v9 = vmov 0   ;;  %vm1888_vm0 = vcmp.gt.s32.totalorder %v1174_v48, 3  ;;  %v1244_v15 = vsub.s32 7, %v1174_v48 }
  0x30   : > { %v578_v32 = vadd.f32 %v577_v29, %v575_v23 }
  0x31   : > { %1044 = vmatmul.mubr.msk.bf16.vlgmr.msra.gmra.mxu0 %vm193_vm1, %v190_v27  ;;  %v182_v33 = vrot.slane %v181_v31, 4 }
  0x32   : > { %1052 = vmatmul.mubr.msk.bf16.vlgmr.msra.gmra.mxu1 %vm193_vm1, %v587_v30  ;;  %v579_v34 = vrot.slane %v578_v32, 4 }
  0x33   : > { %v183_v35 = vadd.f32 %v182_v33, %v181_v31 }
  0x34   : > { %v580_v36 = vadd.f32 %v579_v34, %v578_v32 }
  0x35   : > { %v184_v37 = vrot.slane %v183_v35, 2 }
  0x36   : > { %v581_v38 = vrot.slane %v580_v36, 2 }
  0x37   : > { %v185_v39 = vadd.f32 %v184_v37, %v183_v35 }
  0x38   : > { %v582_v40 = vadd.f32 %v581_v38, %v580_v36 }
  0x39   : > { %v186_v41 = vrot.slane %v185_v39, 1 }
  0x3a   : > { %v583_v42 = vrot.slane %v582_v40, 1 }
  0x3b   : > { %v187_v43 = vadd.f32 %v186_v41, %v185_v39 }
  0x3c   : > { %v584_v44 = vadd.f32 %v583_v42, %v582_v40 }
  0x3d   : > { %v188_v45 = vmax.f32 %v187_v43, 1e-24 }
  0x3e   : > { %v585_v46 = vmax.f32 %v584_v44, 1e-24 }
  0x3f   : > { %1068 = vrsqrt.f32 %v188_v45 }
  0x40   : > { %1070 = vrsqrt.f32 %v585_v46 }
  0x4c   : > { %v1176_v49 = vpop.eup %1068 }
  0x4d   : > { %v1178_v50 = vpop.eup %1070 }
  0xf1   : > { %v231_v54 = vpop.f32.mrf.mxu0 }
  0xf2   : > { %v1190_v55 = vmul.f32 %v1176_v49, %v231_v54  ;;  %v627_v57 = vpop.f32.mrf.mxu1 }
  0xf3   : > { %v1197_v58 = vmul.f32 %v1178_v50, %v627_v57  ;;  %v1045_v59 = vpop.f32.mrf.mxu0 }
  0xf4   : > { %v243_v60 = vrot.slane %v1190_v55, %v1181_v51  ;;  %v253_v61 = vrot.slane %v1190_v55, %v1184_v52  ;;  %v264_v62 = vrot.slane %v1190_v55, %v1187_v53  ;;  %v1053_v0 = vpop.f32.mrf.mxu1  ;;  %v275_v3 = vrot.slane %v1190_v55, %v1193_v56 }
  0xf5   : > { %v234_v2 = vpop.f32.mrf.mxu0  ;;  %v286_v6 = vrot.slane %v1190_v55, %v1206_v63  ;;  %v297_v11 = vrot.slane %v1190_v55, %v1210_v1  ;;  %v308_v14 = vrot.slane %v1190_v55, %v1225_v7  ;;  %v319_v20 = vrot.slane %v1190_v55, %v1244_v15 }
  0xf6   : > { %vm244_vm4 = vcmp.lt.f32.partialorder %v243_v60, %v1190_v55  ;;  %vm245_vm5 = vcmp.eq.f32.partialorder %v243_v60, %v1190_v55  ;;  %vm255_vm6 = vcmp.eq.f32.partialorder %v253_v61, %v1190_v55  ;;  %v630_v4 = vpop.f32.mrf.mxu1  ;;  %vm254_vm8 = vcmp.lt.f32.partialorder %v253_v61, %v1190_v55 }
  0xf7   : > { %vm247_vm7 = vmand %vm245_vm5, %vm1886_vm2  ;;  %v1046_v5 = vpop.f32.mrf.mxu0  ;;  %vm266_vm10 = vcmp.eq.f32.partialorder %v264_v62, %v1190_v55  ;;  %vm265_vm13 = vcmp.lt.f32.partialorder %v264_v62, %v1190_v55  ;;  %vm277_vm15 = vcmp.eq.f32.partialorder %v275_v3, %v1190_v55  ;;  %vm1889_vm5 = vcmp.gt.s32.totalorder %v1174_v48, 4 }
  0xf8   : > { %vm248_vm9 = vmor %vm244_vm4, %vm247_vm7  ;;  %v1054_v8 = vpop.f32.mrf.mxu1  ;;  %vm276_vm4 = vcmp.lt.f32.partialorder %v275_v3, %v1190_v55  ;;  %vm288_vm7 = vcmp.eq.f32.partialorder %v286_v6, %v1190_v55  ;;  %v1261_v21 = vmul.f32 %v1176_v49, %v234_v2  ;;  %v1268_v23 = vmul.f32 %v1178_v50, %v630_v4 }
  0xf9   : > { %v249_v10 = vsel %vm248_vm9, 1, %v1110_v9  ;;  %vm257_vm12 = vmand %vm255_vm6, %vm1887_vm3  ;;  %vm287_vm9 = vcmp.lt.f32.partialorder %v286_v6, %v1190_v55  ;;  %v639_v25 = vrot.slane %v1197_v58, %v1181_v51  ;;  %v648_v27 = vrot.slane %v1197_v58, %v1184_v52 }
  0xfa   : > { %vm258_vm14 = vmor %vm254_vm8, %vm257_vm12  ;;  %vm299_vm12 = vcmp.eq.f32.partialorder %v297_v11, %v1190_v55  ;;  %v658_v30 = vrot.slane %v1197_v58, %v1187_v53  ;;  %v668_v31 = vrot.slane %v1197_v58, %v1193_v56  ;;  %v678_v34 = vrot.slane %v1197_v58, %v1206_v63 }
  0xfb   : > { %v259_v12 = vsel %vm258_vm14, 1, %v1110_v9  ;;  %vm268_vm1 = vmand %vm266_vm10, %vm1883_vm11  ;;  %v1292_v36 = vrot.slane %v1197_v58, %v1210_v1  ;;  %v708_v38 = vrot.slane %v1197_v58, %v1244_v15  ;;  %v1326_v44 = vrot.slane %v1197_v58, %v1225_v7 }
  0xfc   : > { %v260_v13 = vadd.s32 %v259_v12, %v249_v10  ;;  %vm269_vm6 = vmor %vm265_vm13, %vm268_vm1  ;;  %vm1885_vm13 = vcmp.gt.s32.totalorder %v1174_v48, 5  ;;  %vm298_vm1 = vcmp.lt.f32.partialorder %v297_v11, %v1190_v55  ;;  %v330_v47 = vrot.slane %v1261_v21, %v1181_v51 }
  0xfd   : > { %v270_v16 = vsel %vm269_vm6, 1, %v1110_v9  ;;  %vm279_vm8 = vmand %vm277_vm15, %vm1888_vm0  ;;  %vm1884_vm6 = vcmp.gt.s32.totalorder %v1174_v48, 6  ;;  %vm310_vm15 = vcmp.eq.f32.partialorder %v308_v14, %v1190_v55  ;;  %v339_v54 = vrot.slane %v1261_v21, %v1184_v52 }
  0xfe   : > { %v271_v17 = vadd.s32 %v270_v16, %v260_v13  ;;  %vm280_vm10 = vmor %vm276_vm4, %vm279_vm8  ;;  %v349_v12 = vrot.slane %v1261_v21, %v1187_v53  ;;  %v379_v0 = vrot.slane %v1261_v21, %v1210_v1  ;;  %v1526_v11 = vrot.slane %v1261_v21, %v1225_v7 }
  0xff   : > { %v281_v18 = vsel %vm280_vm10, 1, %v1110_v9  ;;  %vm290_vm14 = vmand %vm288_vm7, %vm1889_vm5  ;;  %vm309_vm7 = vcmp.lt.f32.partialorder %v308_v14, %v1190_v55  ;;  %vm320_vm10 = vcmp.lt.f32.partialorder %v319_v20, %v1190_v55  ;;  %v1419_v20 = vrot.slane %v1261_v21, %v1206_v63 }
 0x100   : > { %v282_v19 = vadd.s32 %v281_v18, %v271_v17  ;;  %vm291_vm11 = vmor %vm287_vm9, %vm290_vm14  ;;  %v325_v33 = vsel %vm320_vm10, 1, %v1110_v9  ;;  %vm650_vm14 = vcmp.eq.f32.partialorder %v648_v27, %v1197_v58 }
 0x101   : > { %v292_v22 = vsel %vm291_vm11, 1, %v1110_v9  ;;  %vm301_vm4 = vmand %vm299_vm12, %vm1885_vm13  ;;  %vm641_vm12 = vcmp.eq.f32.partialorder %v639_v25, %v1197_v58 }
 0x102   : > { %v293_v24 = vadd.s32 %v292_v22, %v282_v19  ;;  %vm302_vm8 = vmor %vm298_vm1, %vm301_vm4  ;;  %vm640_vm1 = vcmp.lt.f32.partialorder %v639_v25, %v1197_v58  ;;  %v1415_v19 = vrot.slane %v1261_v21, %v1193_v56 }
 0x103   : > { %v303_v26 = vsel %vm302_vm8, 1, %v1110_v9  ;;  %vm312_vm9 = vmand %vm310_vm15, %vm1884_vm6  ;;  %vm649_vm15 = vcmp.lt.f32.partialorder %v648_v27, %v1197_v58  ;;  %vm660_vm8 = vcmp.eq.f32.partialorder %v658_v30, %v1197_v58 }
 0x104   : > { %v304_v28 = vadd.s32 %v303_v26, %v293_v24  ;;  %vm313_vm11 = vmor %vm309_vm7, %vm312_vm9  ;;  %vm679_vm9 = vcmp.lt.f32.partialorder %v678_v34, %v1197_v58 }
 0x105   : > { %v314_v29 = vsel %vm313_vm11, 1, %v1110_v9  ;;  %vm1296_vm4 = vmand %vm641_vm12, %vm1886_vm2  ;;  %vm670_vm2 = vcmp.eq.f32.partialorder %v668_v31, %v1197_v58 }
 0x106   : > { %v315_v32 = vadd.s32 %v314_v29, %v304_v28  ;;  %vm651_vm12 = vmand %vm650_vm14, %vm1887_vm3  ;;  %vm680_vm14 = vcmp.eq.f32.partialorder %v678_v34, %v1197_v58 }
 0x107   : > { %vm1319_vm7 = vmor %vm640_vm1, %vm1296_vm4  ;;  %vm1898_vm4 = vcmp.gt.s32.totalorder %v1174_v48, 2 }
 0x108   : > { %v326_v35 = vadd.s32 %v325_v33, %v315_v32  ;;  %vm661_vm3 = vmand %vm660_vm8, %vm1898_vm4  ;;  %vm690_vm4 = vcmp.eq.f32.partialorder %v1292_v36, %v1197_v58  ;;  %v644_v25 = vsel %vm1319_vm7, 1, %v1110_v9 }
 0x109   : > { %vm1361_vm8 = vmand %vm680_vm14, %vm1889_vm5  ;;  %vm332_vm5 = vcmp.eq.f32.partialorder %v330_v47, %v1261_v21  ;;  %vm1920_vm14 = vcmp.gt.s32.totalorder %v1174_v48, 6 }
 0x10a   : > { %vm406_vm11 = vcmp.eq.s32.totalorder %v326_v35, 0  ;;  %vm425_vm10 = vcmp.eq.s32.totalorder %v326_v35, 1  ;;  %vm444_vm6 = vcmp.eq.s32.totalorder %v326_v35, 2  ;;  %vm463_vm13 = vcmp.eq.s32.totalorder %v326_v35, 3 }
 0x10b   : > { %v407_v39 = vsel %vm406_vm11, %v1190_v55, 0.0  ;;  %v426_v40 = vsel %vm425_vm10, %v1190_v55, 0.0  ;;  %v445_v41 = vsel %vm444_vm6, %v1190_v55, 0.0  ;;  %v464_v42 = vsel %vm463_vm13, %v1190_v55, 0.0  ;;  %vm1330_vm6 = vmor %vm649_vm15, %vm651_vm12 }
 0x10c   : > { %vm482_vm11 = vcmp.eq.s32.totalorder %v326_v35, 4  ;;  %vm501_vm10 = vcmp.eq.s32.totalorder %v326_v35, 5  ;;  %vm1335_vm13 = vcmp.lt.f32.partialorder %v708_v38, %v1197_v58  ;;  %v408_v49 = vrot.slane %v407_v39, 4  ;;  %vm1352_vm12 = vmand %vm670_vm2, %vm1888_vm0 }
 0x10d   : > { %v427_v50 = vrot.slane %v426_v40, 4  ;;  %vm520_vm1 = vcmp.eq.s32.totalorder %v326_v35, 6  ;;  %v446_v57 = vrot.slane %v445_v41, 4  ;;  %v465_v59 = vrot.slane %v464_v42, 4 }
 0x10e   : > { %v483_v60 = vsel %vm482_vm11, %v1190_v55, 0.0  ;;  %vm539_vm15 = vcmp.eq.s32.totalorder %v326_v35, 7  ;;  %v502_v62 = vsel %vm501_vm10, %v1190_v55, 0.0  ;;  %vm689_vm11 = vcmp.lt.f32.partialorder %v1292_v36, %v1197_v58 }
 0x10f   : > { %vm700_vm2 = vcmp.eq.f32.partialorder %v1326_v44, %v1197_v58  ;;  %v484_v2 = vrot.slane %v483_v60, 4  ;;  %v521_v3 = vsel %vm520_vm1, %v1190_v55, 0.0  ;;  %vm1903_vm10 = vcmp.lt.f32.partialorder %v658_v30, %v1197_v58 }
 0x110   : > { %vm1374_vm0 = vmor %vm1903_vm10, %vm661_vm3  ;;  %v1383_v5 = vsel %vm1335_vm13, 1, %v1110_v9  ;;  %v409_v6 = vadd.f32 %v408_v49, %v407_v39  ;;  %v428_v8 = vadd.f32 %v427_v50, %v426_v40  ;;  %v540_v10 = vsel %vm539_vm15, %v1190_v55, 0.0 }
 0x111   : > { %vm1906_vm3 = vcmp.lt.f32.partialorder %v668_v31, %v1197_v58  ;;  %v447_v13 = vadd.f32 %v446_v57, %v445_v41  ;;  %v466_v14 = vadd.f32 %v465_v59, %v464_v42  ;;  %v503_v16 = vrot.slane %v502_v62, 4  ;;  %vm1401_vm13 = vmor %vm679_vm9, %vm1361_vm8 }
 0x112   : > { %vm1391_vm1 = vmor %vm1906_vm3, %vm1352_vm12  ;;  %vm341_vm15 = vcmp.eq.f32.partialorder %v339_v54, %v1261_v21  ;;  %v522_v17 = vrot.slane %v521_v3, 4  ;;  %vm331_vm12 = vcmp.lt.f32.partialorder %v330_v47, %v1261_v21  ;;  %vm1911_vm10 = vcmp.gt.s32.totalorder %v1174_v48, 0 }
 0x113   : > { %vm1409_vm3 = vmand %vm332_vm5, %vm1911_vm10  ;;  %v485_v22 = vadd.f32 %v484_v2, %v483_v60  ;;  %v541_v24 = vrot.slane %v540_v10, 4  ;;  %v653_v26 = vsel %vm1330_vm6, 1, %v1110_v9  ;;  %vm1914_vm5 = vcmp.gt.s32.totalorder %v1174_v48, 5 }
 0x114   : > { %vm1432_vm9 = vmand %vm690_vm4, %vm1914_vm5  ;;  %v410_v28 = vrot.slane %v409_v6, 2  ;;  %v429_v29 = vrot.slane %v428_v8, 2  ;;  %vm340_vm8 = vcmp.lt.f32.partialorder %v339_v54, %v1261_v21  ;;  %vm1917_vm10 = vcmp.gt.s32.totalorder %v1174_v48, 1 }
 0x115   : > { %vm1439_vm7 = vmand %vm341_vm15, %vm1917_vm10  ;;  %v448_v31 = vrot.slane %v447_v13, 2  ;;  %v467_v32 = vrot.slane %v466_v14, 2  ;;  %v504_v33 = vadd.f32 %v503_v16, %v502_v62  ;;  %vm351_vm5 = vcmp.eq.f32.partialorder %v349_v12, %v1261_v21 }
 0x116   : > { %vm334_vm4 = vmor %vm331_vm12, %vm1409_vm3  ;;  %v523_v34 = vadd.f32 %v522_v17, %v521_v3  ;;  %v654_v35 = vadd.s32 %v653_v26, %v644_v25  ;;  %vm360_vm10 = vcmp.lt.f32.partialorder %v1415_v19, %v1261_v21  ;;  %vm361_vm6 = vcmp.eq.f32.partialorder %v1415_v19, %v1261_v21 }
 0x117   : > { %vm1454_vm15 = vmand %vm700_vm2, %vm1920_vm14  ;;  %v486_v38 = vrot.slane %v485_v22, 2  ;;  %v542_v39 = vadd.f32 %v541_v24, %v540_v10  ;;  %v663_v40 = vsel %vm1374_vm0, 1, %v1110_v9  ;;  %vm371_vm14 = vcmp.eq.f32.partialorder %v1419_v20, %v1261_v21 }
 0x118   : > { %vm1469_vm2 = vmor %vm340_vm8, %vm1439_vm7  ;;  %v411_v42 = vadd.f32 %v410_v28, %v409_v6  ;;  %v430_v43 = vadd.f32 %v429_v29, %v428_v8  ;;  %v664_v45 = vadd.s32 %v663_v40, %v654_v35  ;;  %v335_v46 = vsel %vm334_vm4, 1, %v1110_v9 }
 0x119   : > { %vm1925_vm12 = vcmp.gt.s32.totalorder %v1174_v48, 2  ;;  %v449_v49 = vadd.f32 %v448_v31, %v447_v13  ;;  %v468_v50 = vadd.f32 %v467_v32, %v466_v14  ;;  %v505_v54 = vrot.slane %v504_v33, 2  ;;  %vm1492_vm3 = vmor %vm689_vm11, %vm1432_vm9 }
 0x11a   : > { %vm1480_vm0 = vmand %vm351_vm5, %vm1925_vm12  ;;  %v673_v57 = vsel %vm1391_vm1, 1, %v1110_v9  ;;  %vm370_vm8 = vcmp.lt.f32.partialorder %v1419_v20, %v1261_v21  ;;  %v524_v60 = vrot.slane %v523_v34, 2  ;;  %vm1930_vm7 = vcmp.lt.f32.partialorder %v1326_v44, %v1197_v58 }
 0x11b   : > { %v674_v61 = vadd.s32 %v673_v57, %v664_v45  ;;  %vm1503_vm1 = vmor %vm1930_vm7, %vm1454_vm15  ;;  %v344_v36 = vsel %vm1469_vm2, 1, %v1110_v9  ;;  %v487_v2 = vadd.f32 %v486_v38, %v485_v22  ;;  %v543_v3 = vrot.slane %v542_v39, 2 }
 0x11c   : > { %v683_v4 = vsel %vm1401_vm13, 1, %v1110_v9  ;;  %v345_v6 = vadd.s32 %v344_v36, %v335_v46  ;;  %vm1933_vm11 = vcmp.lt.f32.partialorder %v349_v12, %v1261_v21  ;;  %v412_v44 = vrot.slane %v411_v42, 1 }
 0x11d   : > { %vm353_vm9 = vmor %vm1933_vm11, %vm1480_vm0  ;;  %v431_v8 = vrot.slane %v430_v43, 1  ;;  %v684_v10 = vadd.s32 %v683_v4, %v674_v61  ;;  %vm1934_vm4 = vcmp.gt.s32.totalorder %v1174_v48, 3  ;;  %v450_v13 = vrot.slane %v449_v49, 1 }
 0x11e   : > { %vm362_vm5 = vmand %vm361_vm6, %vm1934_vm4  ;;  %v469_v14 = vrot.slane %v468_v50, 1  ;;  %v1528_v16 = vadd.f32 %v505_v54, %v504_v33  ;;  %v693_v12 = vsel %vm1492_vm3, 1, %v1110_v9  ;;  %v1533_v55 = vadd.f32 %v524_v60, %v523_v34 }
 0x11f   : > { %v694_v17 = vadd.s32 %v693_v12, %v684_v10  ;;  %v354_v18 = vsel %vm353_vm9, 1, %v1110_v9  ;;  %v399_v22 = vrot.slane %v1261_v21, %v1244_v15  ;;  %v488_v24 = vrot.slane %v487_v2, 1  ;;  %vm363_vm13 = vmor %vm360_vm10, %vm362_vm5 }
 0x120   : > { %v1538_v25 = vadd.f32 %v543_v3, %v542_v39  ;;  %v703_v26 = vsel %vm1503_vm1, 1, %v1110_v9  ;;  %v355_v27 = vadd.s32 %v354_v18, %v345_v6  ;;  %v1546_v28 = vadd.f32 %v412_v44, %v411_v42 }
 0x121   : > { %v704_v29 = vadd.s32 %v703_v26, %v694_v17  ;;  %v718_v30 = vrot.slane %v1268_v23, %v1181_v51  ;;  %v1552_v31 = vrot.slane %v1268_v23, %v1184_v52  ;;  %v1554_v32 = vadd.f32 %v431_v8, %v430_v43 }
 0x122   : > { %v1556_v33 = vadd.f32 %v450_v13, %v449_v49  ;;  %v1558_v34 = vadd.f32 %v469_v14, %v468_v50  ;;  %v507_v35 = vrot.slane %v1528_v16, 1  ;;  %vm1935_vm6 = vcmp.gt.s32.totalorder %v1174_v48, 4 }
 0x123   : > { %vm372_vm15 = vmand %vm371_vm14, %vm1935_vm6  ;;  %v526_v51 = vrot.slane %v1533_v55, 1  ;;  %v714_v19 = vadd.s32 %v1383_v5, %v704_v29  ;;  %v364_v52 = vsel %vm363_vm13, 1, %v1110_v9  ;;  %vm381_vm10 = vcmp.eq.f32.partialorder %v379_v0, %v1261_v21 }
 0x124   : > { %v1570_v37 = vadd.f32 %v488_v24, %v487_v2  ;;  %v545_v38 = vrot.slane %v1538_v25, 1  ;;  %v365_v39 = vadd.s32 %v364_v52, %v355_v27  ;;  %vm380_vm2 = vcmp.lt.f32.partialorder %v379_v0, %v1261_v21  ;;  %vm373_vm14 = vmor %vm370_vm8, %vm372_vm15 }
 0x125   : > { %vm794_vm12 = vcmp.eq.s32.totalorder %v714_v19, 0  ;;  %vm813_vm0 = vcmp.eq.s32.totalorder %v714_v19, 1  ;;  %vm832_vm3 = vcmp.eq.s32.totalorder %v714_v19, 2  ;;  %vm851_vm7 = vcmp.eq.s32.totalorder %v714_v19, 3 }
 0x126   : > { %v795_v5 = vsel %vm794_vm12, %v1197_v58, 0.0  ;;  %v814_v40 = vsel %vm813_vm0, %v1197_v58, 0.0  ;;  %v833_v41 = vsel %vm832_vm3, %v1197_v58, 0.0  ;;  %v852_v42 = vsel %vm851_vm7, %v1197_v58, 0.0 }
 0x127   : > { %vm1936_vm1 = vcmp.gt.s32.totalorder %v1174_v48, 5  ;;  %v796_v43 = vrot.slane %v795_v5, 4  ;;  %v815_v45 = vrot.slane %v814_v40, 4  ;;  %vm391_vm9 = vcmp.eq.f32.partialorder %v1526_v11, %v1261_v21 }
 0x128   : > { %vm382_vm11 = vmand %vm381_vm10, %vm1936_vm1  ;;  %vm720_vm4 = vcmp.eq.f32.partialorder %v718_v30, %v1268_v23  ;;  %v834_v20 = vrot.slane %v833_v41, 4  ;;  %v853_v46 = vrot.slane %v852_v42, 4  ;;  %vm870_vm8 = vcmp.eq.s32.totalorder %v714_v19, 4 }
 0x129   : > { %vm889_vm5 = vcmp.eq.s32.totalorder %v714_v19, 5  ;;  %v797_v47 = vadd.f32 %v796_v43, %v795_v5  ;;  %v374_v49 = vsel %vm373_vm14, 1, %v1110_v9  ;;  %vm1589_vm13 = vmor %vm380_vm2, %vm382_vm11  ;;  %vm729_vm6 = vcmp.eq.f32.partialorder %v1552_v31, %v1268_v23 }
 0x12a   : > { %v737_v54 = vrot.slane %v1268_v23, %v1187_v53  ;;  %v375_v57 = vadd.s32 %v374_v49, %v365_v39  ;;  %vm390_vm15 = vcmp.lt.f32.partialorder %v1526_v11, %v1261_v21  ;;  %vm1939_vm10 = vcmp.gt.s32.totalorder %v1174_v48, 6 }
 0x12b   : > { %vm1601_vm12 = vmand %vm391_vm9, %vm1939_vm10  ;;  %vm1606_vm2 = vcmp.lt.f32.partialorder %v399_v22, %v1261_v21  ;;  %vm719_vm0 = vcmp.lt.f32.partialorder %v718_v30, %v1268_v23  ;;  %v871_v61 = vsel %vm870_vm8, %v1197_v58, 0.0  ;;  %v890_v53 = vsel %vm889_vm5, %v1197_v58, 0.0 }
 0x12c   : > { %vm908_vm3 = vcmp.eq.s32.totalorder %v714_v19, 6  ;;  %vm927_vm7 = vcmp.eq.s32.totalorder %v714_v19, 7  ;;  %vm1944_vm14 = vcmp.gt.s32.totalorder %v1174_v48, 0  ;;  %v816_v36 = vadd.f32 %v815_v45, %v814_v40 }
 0x12d   : > { %vm1617_vm1 = vmand %vm720_vm4, %vm1944_vm14  ;;  %v835_v0 = vadd.f32 %v834_v20, %v833_v41  ;;  %v854_v2 = vadd.f32 %v853_v46, %v852_v42  ;;  %vm728_vm11 = vcmp.lt.f32.partialorder %v1552_v31, %v1268_v23  ;;  %vm1947_vm9 = vcmp.gt.s32.totalorder %v1174_v48, 1 }
 0x12e   : > { %vm1628_vm8 = vmand %vm729_vm6, %vm1947_vm9  ;;  %v1633_v4 = vadd.f32 %v507_v35, %v1528_v16  ;;  %v798_v6 = vrot.slane %v797_v47, 2  ;;  %v384_v44 = vsel %vm1589_vm13, 1, %v1110_v9  ;;  %vm739_vm5 = vcmp.eq.f32.partialorder %v737_v54, %v1268_v23 }
 0x12f   : > { %vm1643_vm4 = vmor %vm390_vm15, %vm1601_vm12  ;;  %v872_v10 = vrot.slane %v871_v61, 4  ;;  %v891_v13 = vrot.slane %v890_v53, 4  ;;  %v909_v14 = vsel %vm908_vm3, %v1197_v58, 0.0  ;;  %v928_v16 = vsel %vm927_vm7, %v1197_v58, 0.0 }
 0x130   : > { %vm1654_vm13 = vmor %vm719_vm0, %vm1617_vm1  ;;  %v1659_v11 = vadd.f32 %v526_v51, %v1533_v55  ;;  %v1662_v17 = vadd.f32 %v545_v38, %v1538_v25  ;;  %v385_v18 = vadd.s32 %v384_v44, %v375_v57  ;;  %v404_v22 = vsel %vm1606_vm2, 1, %v1110_v9 }
 0x131   : > { %vm1672_vm6 = vmor %vm728_vm11, %vm1628_vm8  ;;  %v817_v24 = vrot.slane %v816_v36, 2  ;;  %v836_v55 = vrot.slane %v835_v0, 2  ;;  %v855_v26 = vrot.slane %v854_v2, 2  ;;  %vm738_vm15 = vcmp.lt.f32.partialorder %v737_v54, %v1268_v23 }
 0x132   : > { %vm1956_vm10 = vcmp.gt.s32.totalorder %v1174_v48, 2  ;;  %v1681_v25 = vadd.f32 %v798_v6, %v797_v47  ;;  %v910_v27 = vrot.slane %v909_v14, 4  ;;  %v929_v29 = vrot.slane %v928_v16, 4 }
 0x133   : > { %vm740_vm12 = vmand %vm739_vm5, %vm1956_vm10  ;;  %v1685_v30 = vrot.slane %v1268_v23, %v1193_v56  ;;  %v1687_v31 = vadd.f32 %v872_v10, %v871_v61  ;;  %v1689_v35 = vadd.f32 %v891_v13, %v890_v53  ;;  %v394_v51 = vsel %vm1643_vm4, 1, %v1110_v9 }
 0x134   : > { %v1696_v19 = vrot.slane %v1268_v23, %v1206_v63  ;;  %v395_v52 = vadd.s32 %v394_v51, %v385_v18  ;;  %v723_v38 = vsel %vm1654_vm13, 1, %v1110_v9  ;;  %v732_v56 = vsel %vm1672_vm6, 1, %v1110_v9  ;;  %vm741_vm2 = vmor %vm738_vm15, %vm740_vm12 }
 0x135   : > { %v1706_v39 = vrot.slane %v1268_v23, %v1210_v1  ;;  %v1708_v5 = vadd.f32 %v817_v24, %v816_v36  ;;  %v1710_v40 = vadd.f32 %v836_v55, %v835_v0  ;;  %v1712_v63 = vadd.f32 %v855_v26, %v854_v2 }
 0x136   : > { %v1716_v41 = vrot.slane %v1268_v23, %v1225_v7  ;;  %v800_v42 = vrot.slane %v1681_v25, 1  ;;  %v1719_v43 = vadd.f32 %v910_v27, %v909_v14  ;;  %v1721_v45 = vadd.f32 %v929_v29, %v928_v16 }
 0x137   : > { %v405_v20 = vadd.s32 %v404_v22, %v395_v52  ;;  %v874_v1 = vrot.slane %v1687_v31, 2  ;;  %v893_v46 = vrot.slane %v1689_v35, 2  ;;  %v1725_v47 = vadd.s32 %v732_v56, %v723_v38 }
 0x138   : > { %v1728_v49 = vsel %vm741_vm2, 1, %v1110_v9  ;;  %vm749_vm0 = vcmp.eq.f32.partialorder %v1685_v30, %v1268_v23  ;;  %vm748_vm11 = vcmp.lt.f32.partialorder %v1685_v30, %v1268_v23  ;;  %vm759_vm13 = vcmp.eq.f32.partialorder %v1696_v19, %v1268_v23 }
 0x139   : > { %vm414_vm3 = vcmp.eq.s32.totalorder %v405_v20, 0  ;;  %vm433_vm7 = vcmp.eq.s32.totalorder %v405_v20, 1  ;;  %vm452_vm14 = vcmp.eq.s32.totalorder %v405_v20, 2  ;;  %vm471_vm1 = vcmp.eq.s32.totalorder %v405_v20, 3 }
 0x13a   : > { %v415_v7 = vsel %vm414_vm3, %v1261_v21, 0.0  ;;  %v434_v50 = vsel %vm433_vm7, %v1261_v21, 0.0  ;;  %v453_v54 = vsel %vm452_vm14, %v1261_v21, 0.0  ;;  %v472_v57 = vsel %vm471_vm1, %v1261_v21, 0.0 }
 0x13b   : > { %v416_v59 = vrot.slane %v415_v7, 4  ;;  %v435_v60 = vrot.slane %v434_v50, 4  ;;  %v454_v61 = vrot.slane %v453_v54, 4  ;;  %v473_v53 = vrot.slane %v472_v57, 4 }
 0x13c   : > { %vm490_vm9 = vcmp.eq.s32.totalorder %v405_v20, 4  ;;  %vm509_vm8 = vcmp.eq.s32.totalorder %v405_v20, 5  ;;  %vm528_vm4 = vcmp.eq.s32.totalorder %v405_v20, 6  ;;  %vm547_vm5 = vcmp.eq.s32.totalorder %v405_v20, 7 }
 0x13d   : > { %v417_v62 = vadd.f32 %v416_v59, %v415_v7  ;;  %v436_v36 = vadd.f32 %v435_v60, %v434_v50  ;;  %v455_v0 = vadd.f32 %v454_v61, %v453_v54  ;;  %v474_v2 = vadd.f32 %v473_v53, %v472_v57 }
 0x13e   : > { %v491_v3 = vsel %vm490_vm9, %v1261_v21, 0.0  ;;  %v510_v6 = vsel %vm509_vm8, %v1261_v21, 0.0  ;;  %v529_v44 = vsel %vm528_vm4, %v1261_v21, 0.0  ;;  %v548_v8 = vsel %vm547_vm5, %v1261_v21, 0.0 }
 0x13f   : > { %v418_v10 = vrot.slane %v417_v62, 2  ;;  %v437_v13 = vrot.slane %v436_v36, 2  ;;  %v456_v14 = vrot.slane %v455_v0, 2  ;;  %v475_v16 = vrot.slane %v474_v2, 2 }
 0x140   : > { %vm769_vm6 = vcmp.eq.f32.partialorder %v1706_v39, %v1268_v23  ;;  %v492_v12 = vrot.slane %v491_v3, 4  ;;  %v511_v18 = vrot.slane %v510_v6, 4  ;;  %v530_v22 = vrot.slane %v529_v44, 4 }
 0x141   : > { %v549_v58 = vrot.slane %v548_v8, 4  ;;  %vm758_vm15 = vcmp.lt.f32.partialorder %v1696_v19, %v1268_v23  ;;  %v419_v24 = vadd.f32 %v418_v10, %v417_v62  ;;  %v438_v55 = vadd.f32 %v437_v13, %v436_v36 }
 0x142   : > { %v457_v26 = vadd.f32 %v456_v14, %v455_v0  ;;  %v476_v27 = vadd.f32 %v475_v16, %v474_v2  ;;  %v493_v29 = vadd.f32 %v492_v12, %v491_v3  ;;  %v512_v21 = vadd.f32 %v511_v18, %v510_v6 }
 0x143   : > { %v531_v51 = vadd.f32 %v530_v22, %v529_v44  ;;  %v550_v52 = vadd.f32 %v549_v58, %v548_v8  ;;  %vm768_vm10 = vcmp.lt.f32.partialorder %v1706_v39, %v1268_v23  ;;  %v420_v38 = vrot.slane %v419_v24, 1 }
 0x144   : > { %v439_v56 = vrot.slane %v438_v55, 1  ;;  %v458_v20 = vrot.slane %v457_v26, 1  ;;  %v477_v7 = vrot.slane %v476_v27, 1  ;;  %vm1957_vm12 = vcmp.gt.s32.totalorder %v1174_v48, 3 }
 0x145   : > { %vm750_vm2 = vmand %vm749_vm0, %vm1957_vm12  ;;  %v494_v50 = vrot.slane %v493_v29, 2  ;;  %v513_v54 = vrot.slane %v512_v21, 2  ;;  %v532_v57 = vrot.slane %v531_v51, 2  ;;  %v551_v59 = vrot.slane %v550_v52, 2 }
 0x146   : > { %v421_v60 = vadd.f32 %v420_v38, %v419_v24  ;;  %v440_v61 = vadd.f32 %v439_v56, %v438_v55  ;;  %v459_v53 = vadd.f32 %v458_v20, %v457_v26  ;;  %v478_v62 = vadd.f32 %v477_v7, %v476_v27  ;;  %vm751_vm3 = vmor %vm748_vm11, %vm750_vm2 }
 0x147   : > { %v495_v36 = vadd.f32 %v494_v50, %v493_v29  ;;  %v514_v0 = vadd.f32 %v513_v54, %v512_v21  ;;  %v533_v2 = vadd.f32 %v532_v57, %v531_v51  ;;  %v552_v3 = vadd.f32 %v551_v59, %v550_v52 }
 0x148   : > { %v422_v6 = vsub.f32 %v1546_v28, %v421_v60  ;;  %v441_v44 = vsub.f32 %v1554_v32, %v440_v61  ;;  %v460_v8 = vsub.f32 %v1556_v33, %v459_v53  ;;  %v479_v10 = vsub.f32 %v1558_v34, %v478_v62 }
 0x149   : > { %v496_v13 = vrot.slane %v495_v36, 1  ;;  %v515_v14 = vrot.slane %v514_v0, 1  ;;  %v534_v16 = vrot.slane %v533_v2, 1  ;;  %v553_v12 = vrot.slane %v552_v3, 1 }
 0x14a   : > { %vm1958_vm0 = vcmp.gt.s32.totalorder %v1174_v48, 4  ;;  %v423_v30 = vmul.f32 %v422_v6, %v422_v6  ;;  %v442_v18 = vmul.f32 %v441_v44, %v441_v44  ;;  %v461_v22 = vmul.f32 %v460_v8, %v460_v8 }
 0x14b   : > { %vm760_vm7 = vmand %vm759_vm13, %vm1958_vm0  ;;  %v752_v28 = vsel %vm751_vm3, 1, %v1110_v9  ;;  %v497_v32 = vadd.f32 %v496_v13, %v495_v36  ;;  %v516_v58 = vadd.f32 %v515_v14, %v514_v0  ;;  %v535_v33 = vadd.f32 %v534_v16, %v533_v2 }
 0x14c   : > { %v554_v24 = vadd.f32 %v553_v12, %v552_v3  ;;  %vm1959_vm14 = vcmp.gt.s32.totalorder %v1174_v48, 5  ;;  %v443_v34 = vadd.f32 %v442_v18, %v423_v30  ;;  %v743_v55 = vadd.s32 %v1728_v49, %v1725_v47  ;;  %vm1778_vm11 = vmor %vm758_vm15, %vm760_vm7 }
 0x14d   : > { %vm770_vm1 = vmand %vm769_vm6, %vm1959_vm14  ;;  %vm778_vm9 = vcmp.lt.f32.partialorder %v1716_v41, %v1268_v23  ;;  %vm779_vm8 = vcmp.eq.f32.partialorder %v1716_v41, %v1268_v23  ;;  %v498_v27 = vsub.f32 %v1570_v37, %v497_v32  ;;  %v517_v29 = vsub.f32 %v1633_v4, %v516_v58 }
 0x14e   : > { %v536_v21 = vsub.f32 %v1659_v11, %v535_v33  ;;  %v555_v47 = vsub.f32 %v1662_v17, %v554_v24  ;;  %vm1962_vm4 = vcmp.gt.s32.totalorder %v1174_v48, 6  ;;  %v462_v19 = vadd.f32 %v461_v22, %v443_v34  ;;  %vm771_vm13 = vmor %vm768_vm10, %vm770_vm1 }
 0x14f   : > { %vm780_vm5 = vmand %vm779_vm8, %vm1962_vm4  ;;  %v480_v49 = vmul.f32 %v479_v10, %v479_v10  ;;  %v753_v51 = vadd.s32 %v752_v28, %v743_v55  ;;  %v787_v52 = vrot.slane %v1268_v23, %v1244_v15  ;;  %v875_v37 = vadd.f32 %v874_v1, %v1687_v31 }
 0x150   : > { %v912_v4 = vrot.slane %v1719_v43, 2  ;;  %v931_v11 = vrot.slane %v1721_v45, 2  ;;  %v762_v48 = vsel %vm1778_vm11, 1, %v1110_v9  ;;  %v819_v17 = vrot.slane %v1708_v5, 1  ;;  %vm781_vm6 = vmor %vm778_vm9, %vm780_vm5 }
 0x151   : > { %v481_v38 = vadd.f32 %v480_v49, %v462_v19  ;;  %v499_v39 = vmul.f32 %v498_v27, %v498_v27  ;;  %v763_v56 = vadd.s32 %v762_v48, %v753_v51  ;;  %v838_v15 = vrot.slane %v1710_v40, 1 }
 0x152   : > { %v857_v31 = vrot.slane %v1712_v63, 1  ;;  %v1814_v1 = vadd.f32 %v893_v46, %v1689_v35  ;;  %v772_v20 = vsel %vm771_vm13, 1, %v1110_v9  ;;  %v518_v50 = vmul.f32 %v517_v29, %v517_v29 }
 0x153   : > { %v500_v7 = vadd.f32 %v499_v39, %v481_v38  ;;  %v773_v54 = vadd.s32 %v772_v20, %v763_v56  ;;  %vm788_vm15 = vcmp.lt.f32.partialorder %v787_v52, %v1268_v23  ;;  %v876_v57 = vrot.slane %v875_v37, 1 }
 0x154   : > { %v1819_v41 = vadd.f32 %v912_v4, %v1719_v43  ;;  %v1822_v59 = vadd.f32 %v931_v11, %v1721_v45  ;;  %v782_v60 = vsel %vm781_vm6, 1, %v1110_v9  ;;  %v537_v53 = vmul.f32 %v536_v21, %v536_v21 }
 0x155   : > { %v519_v61 = vadd.f32 %v518_v50, %v500_v7  ;;  %v783_v35 = vadd.s32 %v782_v60, %v773_v54  ;;  %v1828_v46 = vadd.f32 %v800_v42, %v1681_v25  ;;  %v1831_v62 = vadd.f32 %v819_v17, %v1708_v5 }
 0x156   : > { %v1834_v36 = vadd.f32 %v838_v15, %v1710_v40  ;;  %v792_v43 = vsel %vm788_vm15, 1, %v1110_v9  ;;  %v1838_v45 = vadd.f32 %v857_v31, %v1712_v63  ;;  %v556_v2 = vmul.f32 %v555_v47, %v555_v47 }
 0x157   : > { %v538_v0 = vadd.f32 %v537_v53, %v519_v61  ;;  %v793_v3 = vadd.s32 %v792_v43, %v783_v35  ;;  %v1840_v6 = vadd.f32 %v876_v57, %v875_v37  ;;  %v895_v44 = vrot.slane %v1814_v1, 1 }
 0x158   : > { %v914_v25 = vrot.slane %v1819_v41, 1  ;;  %v933_v5 = vrot.slane %v1822_v59, 1  ;;  %vm946_vm11 = vcmask 1040384  }
 0x159   : > { %v1845_v42 = vadd.f32 %v556_v2, %v538_v0  ;;  %vm802_vm10 = vcmp.eq.s32.totalorder %v793_v3, 0  ;;  %vm821_vm12 = vcmp.eq.s32.totalorder %v793_v3, 1  ;;  %vm840_vm2 = vcmp.eq.s32.totalorder %v793_v3, 2 }
 0x15a   : > { %v803_v9 = vsel %vm802_vm10, %v1268_v23, 0.0  ;;  %v822_v40 = vsel %vm821_vm12, %v1268_v23, 0.0  ;;  %v841_v63 = vsel %vm840_vm2, %v1268_v23, 0.0  ;;  %vm859_vm3 = vcmp.eq.s32.totalorder %v793_v3, 3 }
 0x15b   : > { %v804_v8 = vrot.slane %v803_v9, 4  ;;  %v823_v10 = vrot.slane %v822_v40, 4  ;;  %v842_v13 = vrot.slane %v841_v63, 4  ;;  %v860_v14 = vsel %vm859_vm3, %v1268_v23, 0.0 }
 0x15c   : > { %v861_v16 = vrot.slane %v860_v14, 4  ;;  %vm878_vm0 = vcmp.eq.s32.totalorder %v793_v3, 4  ;;  %vm897_vm7 = vcmp.eq.s32.totalorder %v793_v3, 5  ;;  %vm916_vm14 = vcmp.eq.s32.totalorder %v793_v3, 6 }
 0x15d   : > { %v805_v12 = vadd.f32 %v804_v8, %v803_v9  ;;  %v824_v30 = vadd.f32 %v823_v10, %v822_v40  ;;  %v843_v18 = vadd.f32 %v842_v13, %v841_v63  ;;  %v879_v22 = vsel %vm878_vm0, %v1268_v23, 0.0 }
 0x15e   : > { %v862_v28 = vadd.f32 %v861_v16, %v860_v14  ;;  %v880_v32 = vrot.slane %v879_v22, 4  ;;  %v898_v58 = vsel %vm897_vm7, %v1268_v23, 0.0  ;;  %v917_v33 = vsel %vm916_vm14, %v1268_v23, 0.0 }
 0x15f   : > { %v806_v24 = vrot.slane %v805_v12, 2  ;;  %v825_v34 = vrot.slane %v824_v30, 2  ;;  %v844_v55 = vrot.slane %v843_v18, 2  ;;  %v899_v26 = vrot.slane %v898_v58, 4 }
 0x160   : > { %v863_v27 = vrot.slane %v862_v28, 2  ;;  %v881_v29 = vadd.f32 %v880_v32, %v879_v22  ;;  %v918_v21 = vrot.slane %v917_v33, 4  ;;  %vm935_vm1 = vcmp.eq.s32.totalorder %v793_v3, 7 }
 0x161   : > { %v807_v47 = vadd.f32 %v806_v24, %v805_v12  ;;  %v826_v19 = vadd.f32 %v825_v34, %v824_v30  ;;  %v845_v49 = vadd.f32 %v844_v55, %v843_v18  ;;  %v900_v51 = vadd.f32 %v899_v26, %v898_v58 }
 0x162   : > { %v864_v52 = vadd.f32 %v863_v27, %v862_v28  ;;  %v882_v37 = vrot.slane %v881_v29, 2  ;;  %v919_v4 = vadd.f32 %v918_v21, %v917_v33  ;;  %v936_v11 = vsel %vm935_vm1, %v1268_v23, 0.0 }
 0x163   : > { %v808_v48 = vrot.slane %v807_v47, 1  ;;  %v827_v17 = vrot.slane %v826_v19, 1  ;;  %v846_v38 = vrot.slane %v845_v49, 1  ;;  %v901_v39 = vrot.slane %v900_v51, 2 }
 0x164   : > { %v865_v56 = vrot.slane %v864_v52, 1  ;;  %v883_v15 = vadd.f32 %v882_v37, %v881_v29  ;;  %v920_v31 = vrot.slane %v919_v4, 2  ;;  %v937_v20 = vrot.slane %v936_v11, 4 }
 0x165   : > { %v809_v7 = vadd.f32 %v808_v48, %v807_v47  ;;  %v828_v50 = vadd.f32 %v827_v17, %v826_v19  ;;  %v847_v54 = vadd.f32 %v846_v38, %v845_v49  ;;  %v902_v57 = vadd.f32 %v901_v39, %v900_v51 }
 0x166   : > { %v866_v60 = vadd.f32 %v865_v56, %v864_v52  ;;  %v884_v61 = vrot.slane %v883_v15, 1  ;;  %v921_v53 = vadd.f32 %v920_v31, %v919_v4  ;;  %v938_v35 = vadd.f32 %v937_v20, %v936_v11 }
 0x167   : > { %v810_v43 = vsub.f32 %v1828_v46, %v809_v7  ;;  %v829_v23 = vsub.f32 %v1831_v62, %v828_v50  ;;  %v848_v0 = vsub.f32 %v1834_v36, %v847_v54  ;;  %v903_v2 = vrot.slane %v902_v57, 1 }
 0x168   : > { %v867_v3 = vsub.f32 %v1838_v45, %v866_v60  ;;  %v885_v9 = vadd.f32 %v884_v61, %v883_v15  ;;  %v922_v40 = vrot.slane %v921_v53, 1  ;;  %v939_v63 = vrot.slane %v938_v35, 2 }
 0x169   : > { %v896_v8 = vadd.f32 %v895_v44, %v1814_v1  ;;  %v811_v10 = vmul.f32 %v810_v43, %v810_v43  ;;  %v830_v13 = vmul.f32 %v829_v23, %v829_v23  ;;  %v904_v14 = vadd.f32 %v903_v2, %v902_v57 }
 0x16a   : > { %v915_v46 = vadd.f32 %v914_v25, %v1819_v41  ;;  %v886_v62 = vsub.f32 %v1840_v6, %v885_v9  ;;  %v923_v36 = vadd.f32 %v922_v40, %v921_v53  ;;  %v940_v16 = vadd.f32 %v939_v63, %v938_v35 }
 0x16b   : > { %v831_v45 = vadd.f32 %v830_v13, %v811_v10  ;;  %v849_v12 = vmul.f32 %v848_v0, %v848_v0  ;;  %v905_v30 = vsub.f32 %v896_v8, %v904_v14  ;;  %v868_v1 = vmul.f32 %v867_v3, %v867_v3 }
 0x16c   : > { %v924_v18 = vsub.f32 %v915_v46, %v923_v36  ;;  %v941_v22 = vrot.slane %v940_v16, 1  ;;  %v934_v44 = vadd.f32 %v933_v5, %v1822_v59  ;;  %v887_v41 = vmul.f32 %v886_v62, %v886_v62 }
 0x16d   : > { %v850_v28 = vadd.f32 %v849_v12, %v831_v45  ;;  %v906_v33 = vmul.f32 %v905_v30, %v905_v30 }
 0x16e   : > { %v942_v32 = vadd.f32 %v941_v22, %v940_v16  ;;  %v925_v34 = vmul.f32 %v924_v18, %v924_v18 }
 0x16f   : > { %v869_v58 = vadd.f32 %v868_v1, %v850_v28 }
 0x170   : > { %v943_v25 = vsub.f32 %v934_v44, %v942_v32 }
 0x171   : > { %v888_v6 = vadd.f32 %v887_v41, %v869_v58 }
 0x172   : > { %v944_v26 = vmul.f32 %v943_v25, %v943_v25 }
 0x173   : > { %v907_v24 = vadd.f32 %v906_v33, %v888_v6 }
 0x175   : > { %v926_v55 = vadd.f32 %v925_v34, %v907_v24 }
 0x177   : > { %v945_v27 = vadd.f32 %v944_v26, %v926_v55 }
 0x179   : > { %v947_v59 = vsel %vm946_vm11, %v1845_v42, %v945_v27 }
 0x17a   : > { %948 = vst [vmem:[%s158_s28] sm:$0x3] %v947_v59 }
 0x17b PF: > { %s24_s1 = sadd.s32 1, %s1104_s1  }
 0x17c   : > { %p21_p1 = scmp.ge.s32.totalorder %s24_s1, 4  }
 0x17e   :  { %23 = sbr.rel (!%p21_p1) target bundleno = 26 (0x1a), region = 63 }

</bundles_post_ra>
